<compile_context>
chip_gen: v6e
topology: v6e:2x2x1
jax: 0.10.0
libtpu: 0.0.40
codegen_flags: <defaults>
</compile_context>

<pallas_src>
import jax
import jax.numpy as jnp
from jax import lax
from jax.experimental import pallas as pl
from jax.experimental.pallas import tpu as pltpu

D_MODEL = 32
N_HEADS = 4
D_K = D_MODEL // N_HEADS
D_FF = 64
EPS = 1e-6
NEG_BIG = 1e9


# ----------------------------------------------------------------------------
# In-kernel helpers (traced inside the single fused kernel body)
# ----------------------------------------------------------------------------
def _layer_norm(x, g, b):
    # torch.Tensor.std is unbiased (n-1); eps is added to std (not var).
    mean = jnp.mean(x, axis=-1, keepdims=True)
    diff = x - mean
    var = jnp.sum(diff * diff, axis=-1, keepdims=True) / (x.shape[-1] - 1)
    std = jnp.sqrt(var)
    return g * diff * pl.reciprocal(std + EPS, approx=True) + b


def _attention(q, k, v, add_mask):
    """q: (Sq, D), k/v: (Sk, D), add_mask: (Sq, Sk) additive (0 or -1e9).

    Static (unrolled) loop over heads; lane-dense (Sq, D) output."""
    scale = 1.0 / jnp.sqrt(jnp.float32(D_K))
    outs = []
    for h in range(N_HEADS):
        sl = slice(h * D_K, (h + 1) * D_K)
        qh, kh, vh = q[:, sl], k[:, sl], v[:, sl]
        # contract over d_k without materializing k.T (trans_b MXU mode)
        s = lax.dot_general(qh, kh, (((1,), (1,)), ((), ())),
                            preferred_element_type=jnp.float32) * scale
        s = s + add_mask
        s = s - jnp.max(s, axis=-1, keepdims=True)
        p = jnp.exp(s)
        p = p * pl.reciprocal(jnp.sum(p, axis=-1, keepdims=True), approx=True)
        outs.append(jnp.dot(p, vh, preferred_element_type=jnp.float32))
    return jnp.concatenate(outs, axis=-1)  # (Sq, D)


# ----------------------------------------------------------------------------
# Fused decoder-layer kernel (one grid step = one batch element)
# ----------------------------------------------------------------------------
def _decoder_layer_kernel(x_ref, mem_ref, tgt_m_ref, src_m_ref,
                          ln0_g, ln0_b, ln1_g, ln1_b, ln2_g, ln2_b,
                          sa_wqkv, sa_bqkv, sa_wo, sa_bo,
                          ca_wq, ca_bq, ca_wkv, ca_bkv, ca_wo, ca_bo,
                          ff_w1, ff_b1, ff_w2, ff_b2,
                          o_ref):
    x = x_ref[0]            # (S_tgt, D)
    mem = mem_ref[0]        # (S_src, D)
    # torch: scores.masked_fill(mask == 0, -1e9)  -> additive mask, in-kernel.
    tgt_add = jnp.where(tgt_m_ref[0] == 0.0, -NEG_BIG, 0.0)   # (S_tgt, S_tgt)
    src_add = jnp.where(src_m_ref[0] == 0.0, -NEG_BIG, 0.0)   # (S_tgt, S_src)

    # ---- sublayer[0]: x + self_attn(LN(x)) ----------------------------------
    h = _layer_norm(x, ln0_g[...], ln0_b[...])
    qkv = jnp.dot(h, sa_wqkv[...], preferred_element_type=jnp.float32) + sa_bqkv[...]
    q = qkv[:, 0 * D_MODEL:1 * D_MODEL]
    k = qkv[:, 1 * D_MODEL:2 * D_MODEL]
    v = qkv[:, 2 * D_MODEL:3 * D_MODEL]
    attn = _attention(q, k, v, tgt_add)
    x = x + jnp.dot(attn, sa_wo[...], preferred_element_type=jnp.float32) + sa_bo[...]

    # ---- sublayer[1]: x + src_attn(LN(x), memory, memory) -------------------
    h = _layer_norm(x, ln1_g[...], ln1_b[...])
    q = jnp.dot(h, ca_wq[...], preferred_element_type=jnp.float32) + ca_bq[...]
    kv = jnp.dot(mem, ca_wkv[...], preferred_element_type=jnp.float32) + ca_bkv[...]
    k = kv[:, 0 * D_MODEL:1 * D_MODEL]
    v = kv[:, 1 * D_MODEL:2 * D_MODEL]
    attn = _attention(q, k, v, src_add)
    x = x + jnp.dot(attn, ca_wo[...], preferred_element_type=jnp.float32) + ca_bo[...]

    # ---- sublayer[2]: x + FFN(LN(x))  (FF1 + relu + FF2 fused) ---------------
    h = _layer_norm(x, ln2_g[...], ln2_b[...])
    f = jnp.dot(h, ff_w1[...], preferred_element_type=jnp.float32) + ff_b1[...]
    f = jnp.maximum(f, 0.0)
    x = x + jnp.dot(f, ff_w2[...], preferred_element_type=jnp.float32) + ff_b2[...]

    # TODO(synk): dropout omitted (eval/inference mode -> identity).
    o_ref[0] = x


# ----------------------------------------------------------------------------
# Wrapper: one pallas_call for the whole layer (jitted -> single dispatch)
# ----------------------------------------------------------------------------
def _decoder_layer_forward(x, memory, src_mask, tgt_mask, params):
    """x: (B, S_tgt, D); memory: (B, S_src, D); masks: (B, S_tgt, S_*) floats
    where 0 means masked (as in torch masked_fill(mask == 0, -1e9))."""
    B, S, D = x.shape
    Ssrc = memory.shape[1]

    sa = params["self_attn"]
    ca = params["src_attn"]
    # Merge Q|K|V (self) and K|V (cross) into single lane-dense matmuls.
    sa_wqkv = jnp.concatenate([sa["wq"], sa["wk"], sa["wv"]], axis=1)      # (D, 3D)
    sa_bqkv = jnp.concatenate([sa["bq"], sa["bk"], sa["bv"]]).reshape(1, -1)
    ca_wkv = jnp.concatenate([ca["wk"], ca["wv"]], axis=1)                 # (D, 2D)
    ca_bkv = jnp.concatenate([ca["bk"], ca["bv"]]).reshape(1, -1)

    weights = [
        params["ln0_g"].reshape(1, -1), params["ln0_b"].reshape(1, -1),
        params["ln1_g"].reshape(1, -1), params["ln1_b"].reshape(1, -1),
        params["ln2_g"].reshape(1, -1), params["ln2_b"].reshape(1, -1),
        sa_wqkv, sa_bqkv, sa["wo"], sa["bo"].reshape(1, -1),
        ca["wq"], ca["bq"].reshape(1, -1), ca_wkv, ca_bkv,
        ca["wo"], ca["bo"].reshape(1, -1),
        params["ff_w1"], params["ff_b1"].reshape(1, -1),
        params["ff_w2"], params["ff_b2"].reshape(1, -1),
    ]

    def full_spec(a):
        nd = a.ndim
        return pl.BlockSpec(a.shape, lambda b, _nd=nd: (0,) * _nd)

    flops = 2 * B * (
        S * D * (3 * D) + 2 * S * S * D + S * D * D                       # self-attn
        + S * D * D + Ssrc * D * (2 * D) + 2 * S * Ssrc * D + S * D * D   # cross-attn
        + 2 * S * D * D_FF                                                # FFN
    )
    transc = B * N_HEADS * (S * S + S * Ssrc)                             # exp() count
    bytes_acc = 4 * (2 * B * S * D + B * Ssrc * D + B * S * S + B * S * Ssrc) \
        + 4 * (3 * D * D + 2 * D * D + 3 * D * D + 2 * D * D_FF + 10 * D)

    return pl.pallas_call(
        _decoder_layer_kernel,
        out_shape=jax.ShapeDtypeStruct((B, S, D), jnp.float32),
        grid=(B,),
        in_specs=[
            pl.BlockSpec((1, S, D), lambda b: (b, 0, 0)),
            pl.BlockSpec((1, Ssrc, D), lambda b: (b, 0, 0)),
            pl.BlockSpec((1, S, S), lambda b: (b, 0, 0)),
            pl.BlockSpec((1, S, Ssrc), lambda b: (b, 0, 0)),
        ] + [full_spec(w) for w in weights],
        out_specs=pl.BlockSpec((1, S, D), lambda b: (b, 0, 0)),
        compiler_params=pltpu.CompilerParams(
            dimension_semantics=("parallel",)),
        cost_estimate=pl.CostEstimate(
            flops=int(flops), transcendentals=int(transc),
            bytes_accessed=int(bytes_acc)),
    )(x, memory, tgt_mask, src_mask, *weights)


decoder_layer_forward = jax.jit(_decoder_layer_forward)


# ----------------------------------------------------------------------------
# Pure-JAX reference (same math) for a correctness sanity check
# ----------------------------------------------------------------------------
def _ref_ln(x, g, b):
    mean = x.mean(-1, keepdims=True)
    std = jnp.sqrt(((x - mean) ** 2).sum(-1, keepdims=True) / (x.shape[-1] - 1))
    return g * (x - mean) / (std + EPS) + b


def _ref_mha(x_q, x_kv, mask, p):
    hi = jax.lax.Precision.HIGHEST
    B, Sq, D = x_q.shape
    Skv = x_kv.shape[1]
    q = (x_q @ p["wq"] + p["bq"]).reshape(B, Sq, N_HEADS, D_K).transpose(0, 2, 1, 3)
    k = (x_kv @ p["wk"] + p["bk"]).reshape(B, Skv, N_HEADS, D_K).transpose(0, 2, 1, 3)
    v = (x_kv @ p["wv"] + p["bv"]).reshape(B, Skv, N_HEADS, D_K).transpose(0, 2, 1, 3)
    s = jnp.einsum("bhqd,bhkd->bhqk", q, k, precision=hi) / jnp.sqrt(jnp.float32(D_K))
    s = jnp.where(mask[:, None, :, :] == 0.0, -NEG_BIG, s)
    a = jax.nn.softmax(s, axis=-1)
    o = jnp.einsum("bhqk,bhkd->bhqd", a, v, precision=hi)
    o = o.transpose(0, 2, 1, 3).reshape(B, Sq, D)
    return o @ p["wo"] + p["bo"]


def _ref_forward(x, memory, src_mask, tgt_mask, p):
    h = _ref_ln(x, p["ln0_g"], p["ln0_b"])
    x = x + _ref_mha(h, h, tgt_mask, p["self_attn"])
    h = _ref_ln(x, p["ln1_g"], p["ln1_b"])
    x = x + _ref_mha(h, memory, src_mask, p["src_attn"])
    h = _ref_ln(x, p["ln2_g"], p["ln2_b"])
    ff = jnp.maximum(h @ p["ff_w1"] + p["ff_b1"], 0.0) @ p["ff_w2"] + p["ff_b2"]
    return x + ff


# ----------------------------------------------------------------------------
# Deterministic parameter init + run
# ----------------------------------------------------------------------------
def _init_params(key):
    counter = [0]

    def w(shape):
        counter[0] += 1
        k = jax.random.fold_in(key, counter[0])
        return (0.1 * jax.random.normal(k, shape)).astype(jnp.float32)

    def attn_params():
        return {
            "wq": w((D_MODEL, D_MODEL)), "bq": w((D_MODEL,)),
            "wk": w((D_MODEL, D_MODEL)), "bk": w((D_MODEL,)),
            "wv": w((D_MODEL, D_MODEL)), "bv": w((D_MODEL,)),
            "wo": w((D_MODEL, D_MODEL)), "bo": w((D_MODEL,)),
        }

    params = {
        "self_attn": attn_params(),
        "src_attn": attn_params(),
        "ff_w1": w((D_MODEL, D_FF)), "ff_b1": w((D_FF,)),
        "ff_w2": w((D_FF, D_MODEL)), "ff_b2": w((D_MODEL,)),
    }
    for i in range(3):
        params[f"ln{i}_g"] = jnp.ones((D_MODEL,), jnp.float32) + 0.01 * w((D_MODEL,))
        params[f"ln{i}_b"] = 0.01 * w((D_MODEL,))
    return params


if __name__ == "__main__":
    B, S_TGT, S_SRC = 2, 8, 8
    root = jax.random.PRNGKey(0)
    k_x, k_mem, k_p = jax.random.split(root, 3)

    x = jax.random.normal(k_x, (B, S_TGT, D_MODEL), dtype=jnp.float32)
    memory = jax.random.normal(k_mem, (B, S_SRC, D_MODEL), dtype=jnp.float32)
    params = _init_params(k_p)

    # tgt_mask: causal; src_mask: all-visible (floats, 0 => masked).
    tgt_mask = jnp.tril(jnp.ones((S_TGT, S_TGT), jnp.float32))[None].repeat(B, 0)
    src_mask = jnp.ones((B, S_TGT, S_SRC), jnp.float32)

    out = decoder_layer_forward(x, memory, src_mask, tgt_mask, params)
    out = jax.block_until_ready(out)

    ref = _ref_forward(x, memory, src_mask, tgt_mask, params)
    assert out.shape == (B, S_TGT, D_MODEL)
    assert bool(jnp.allclose(out, ref, atol=1e-2, rtol=1e-2)), "mismatch vs reference"

    print("KERNEL_OK")
</pallas_src>

<mosaic_0001>
module attributes {stable_mosaic.version = 11 : i64} {
  func.func @_decoder_layer_kernel(%arg0: i32, %arg1: memref<1x8x32xf32, #tpu.memory_space<vmem>>, %arg2: memref<1x8x32xf32, #tpu.memory_space<vmem>>, %arg3: memref<1x8x8xf32, #tpu.memory_space<vmem>>, %arg4: memref<1x8x8xf32, #tpu.memory_space<vmem>>, %arg5: memref<1x32xf32, #tpu.memory_space<vmem>>, %arg6: memref<1x32xf32, #tpu.memory_space<vmem>>, %arg7: memref<1x32xf32, #tpu.memory_space<vmem>>, %arg8: memref<1x32xf32, #tpu.memory_space<vmem>>, %arg9: memref<1x32xf32, #tpu.memory_space<vmem>>, %arg10: memref<1x32xf32, #tpu.memory_space<vmem>>, %arg11: memref<32x96xf32, #tpu.memory_space<vmem>>, %arg12: memref<1x96xf32, #tpu.memory_space<vmem>>, %arg13: memref<32x32xf32, #tpu.memory_space<vmem>>, %arg14: memref<1x32xf32, #tpu.memory_space<vmem>>, %arg15: memref<32x32xf32, #tpu.memory_space<vmem>>, %arg16: memref<1x32xf32, #tpu.memory_space<vmem>>, %arg17: memref<32x64xf32, #tpu.memory_space<vmem>>, %arg18: memref<1x64xf32, #tpu.memory_space<vmem>>, %arg19: memref<32x32xf32, #tpu.memory_space<vmem>>, %arg20: memref<1x32xf32, #tpu.memory_space<vmem>>, %arg21: memref<32x64xf32, #tpu.memory_space<vmem>>, %arg22: memref<1x64xf32, #tpu.memory_space<vmem>>, %arg23: memref<64x32xf32, #tpu.memory_space<vmem>>, %arg24: memref<1x32xf32, #tpu.memory_space<vmem>>, %arg25: memref<1x8x32xf32, #tpu.memory_space<vmem>>) attributes {dimension_semantics = [#tpu.dimension_semantics<parallel>], iteration_bounds = array<i64: 2>, scalar_prefetch = 0 : i64, scratch_operands = 0 : i64, tpu.core_type = #tpu.core_type<tc>, window_params = [{transform_indices = @transform_0, window_bounds = array<i64: 1, 8, 32>}, {transform_indices = @transform_1, window_bounds = array<i64: 1, 8, 32>}, {transform_indices = @transform_2, window_bounds = array<i64: 1, 8, 8>}, {transform_indices = @transform_3, window_bounds = array<i64: 1, 8, 8>}, {pipeline_mode = #tpu.pipeline_mode<synchronous>, transform_indices = @transform_4, window_bounds = array<i64: 1, 32>}, {pipeline_mode = #tpu.pipeline_mode<synchronous>, transform_indices = @transform_5, window_bounds = array<i64: 1, 32>}, {pipeline_mode = #tpu.pipeline_mode<synchronous>, transform_indices = @transform_6, window_bounds = array<i64: 1, 32>}, {pipeline_mode = #tpu.pipeline_mode<synchronous>, transform_indices = @transform_7, window_bounds = array<i64: 1, 32>}, {pipeline_mode = #tpu.pipeline_mode<synchronous>, transform_indices = @transform_8, window_bounds = array<i64: 1, 32>}, {pipeline_mode = #tpu.pipeline_mode<synchronous>, transform_indices = @transform_9, window_bounds = array<i64: 1, 32>}, {pipeline_mode = #tpu.pipeline_mode<synchronous>, transform_indices = @transform_10, window_bounds = array<i64: 32, 96>}, {pipeline_mode = #tpu.pipeline_mode<synchronous>, transform_indices = @transform_11, window_bounds = array<i64: 1, 96>}, {pipeline_mode = #tpu.pipeline_mode<synchronous>, transform_indices = @transform_12, window_bounds = array<i64: 32, 32>}, {pipeline_mode = #tpu.pipeline_mode<synchronous>, transform_indices = @transform_13, window_bounds = array<i64: 1, 32>}, {pipeline_mode = #tpu.pipeline_mode<synchronous>, transform_indices = @transform_14, window_bounds = array<i64: 32, 32>}, {pipeline_mode = #tpu.pipeline_mode<synchronous>, transform_indices = @transform_15, window_bounds = array<i64: 1, 32>}, {pipeline_mode = #tpu.pipeline_mode<synchronous>, transform_indices = @transform_16, window_bounds = array<i64: 32, 64>}, {pipeline_mode = #tpu.pipeline_mode<synchronous>, transform_indices = @transform_17, window_bounds = array<i64: 1, 64>}, {pipeline_mode = #tpu.pipeline_mode<synchronous>, transform_indices = @transform_18, window_bounds = array<i64: 32, 32>}, {pipeline_mode = #tpu.pipeline_mode<synchronous>, transform_indices = @transform_19, window_bounds = array<i64: 1, 32>}, {pipeline_mode = #tpu.pipeline_mode<synchronous>, transform_indices = @transform_20, window_bounds = array<i64: 32, 64>}, {pipeline_mode = #tpu.pipeline_mode<synchronous>, transform_indices = @transform_21, window_bounds = array<i64: 1, 64>}, {pipeline_mode = #tpu.pipeline_mode<synchronous>, transform_indices = @transform_22, window_bounds = array<i64: 64, 32>}, {pipeline_mode = #tpu.pipeline_mode<synchronous>, transform_indices = @transform_23, window_bounds = array<i64: 1, 32>}, {transform_indices = @transform_24, window_bounds = array<i64: 1, 8, 32>}]} {
    %c0 = arith.constant 0 : index
    %c0_0 = arith.constant 0 : index
    %c0_1 = arith.constant 0 : index
    %0 = vector.load %arg1[%c0, %c0_0, %c0_1] : memref<1x8x32xf32, #tpu.memory_space<vmem>>, vector<1x8x32xf32>
    %1 = vector.shape_cast %0 : vector<1x8x32xf32> to vector<8x32xf32>
    %c0_2 = arith.constant 0 : index
    %c0_3 = arith.constant 0 : index
    %c0_4 = arith.constant 0 : index
    %2 = vector.load %arg2[%c0_2, %c0_3, %c0_4] : memref<1x8x32xf32, #tpu.memory_space<vmem>>, vector<1x8x32xf32>
    %3 = vector.shape_cast %2 : vector<1x8x32xf32> to vector<8x32xf32>
    %c0_5 = arith.constant 0 : index
    %c0_6 = arith.constant 0 : index
    %c0_7 = arith.constant 0 : index
    %4 = vector.load %arg3[%c0_5, %c0_6, %c0_7] : memref<1x8x8xf32, #tpu.memory_space<vmem>>, vector<1x8x8xf32>
    %5 = vector.shape_cast %4 : vector<1x8x8xf32> to vector<8x8xf32>
    %cst = arith.constant 0.000000e+00 : f32
    %6 = vector.broadcast %cst : f32 to vector<8x8xf32>
    %7 = arith.cmpf oeq, %5, %6 : vector<8x8xf32>
    %cst_8 = arith.constant -1.000000e+09 : f32
    %cst_9 = arith.constant 0.000000e+00 : f32
    %8 = vector.broadcast %cst_8 : f32 to vector<8x8xf32>
    %9 = vector.broadcast %cst_9 : f32 to vector<8x8xf32>
    %10 = arith.select %7, %8, %9 : vector<8x8xi1>, vector<8x8xf32>
    %c0_10 = arith.constant 0 : index
    %c0_11 = arith.constant 0 : index
    %c0_12 = arith.constant 0 : index
    %11 = vector.load %arg4[%c0_10, %c0_11, %c0_12] : memref<1x8x8xf32, #tpu.memory_space<vmem>>, vector<1x8x8xf32>
    %12 = vector.shape_cast %11 : vector<1x8x8xf32> to vector<8x8xf32>
    %cst_13 = arith.constant 0.000000e+00 : f32
    %13 = vector.broadcast %cst_13 : f32 to vector<8x8xf32>
    %14 = arith.cmpf oeq, %12, %13 : vector<8x8xf32>
    %cst_14 = arith.constant -1.000000e+09 : f32
    %cst_15 = arith.constant 0.000000e+00 : f32
    %15 = vector.broadcast %cst_14 : f32 to vector<8x8xf32>
    %16 = vector.broadcast %cst_15 : f32 to vector<8x8xf32>
    %17 = arith.select %14, %15, %16 : vector<8x8xi1>, vector<8x8xf32>
    %c0_16 = arith.constant 0 : index
    %c0_17 = arith.constant 0 : index
    %18 = vector.load %arg5[%c0_16, %c0_17] : memref<1x32xf32, #tpu.memory_space<vmem>>, vector<1x32xf32>
    %c0_18 = arith.constant 0 : index
    %c0_19 = arith.constant 0 : index
    %19 = vector.load %arg6[%c0_18, %c0_19] : memref<1x32xf32, #tpu.memory_space<vmem>>, vector<1x32xf32>
    %cst_20 = arith.constant dense<0.000000e+00> : vector<8xf32>
    %20 = vector.multi_reduction <add>, %1, %cst_20 [1] : vector<8x32xf32> to vector<8xf32>
    %21 = vector.shape_cast %20 : vector<8xf32> to vector<8x1xf32>
    %cst_21 = arith.constant 3.200000e+01 : f32
    %22 = vector.broadcast %cst_21 : f32 to vector<8x1xf32>
    %23 = arith.divf %21, %22 : vector<8x1xf32>
    %24 = vector.broadcast %23 : vector<8x1xf32> to vector<8x32xf32>
    %25 = arith.subf %1, %24 : vector<8x32xf32>
    %26 = arith.mulf %25, %25 : vector<8x32xf32>
    %cst_22 = arith.constant dense<0.000000e+00> : vector<8xf32>
    %27 = vector.multi_reduction <add>, %26, %cst_22 [1] : vector<8x32xf32> to vector<8xf32>
    %28 = vector.shape_cast %27 : vector<8xf32> to vector<8x1xf32>
    %cst_23 = arith.constant 3.100000e+01 : f32
    %29 = vector.broadcast %cst_23 : f32 to vector<8x1xf32>
    %30 = arith.divf %28, %29 : vector<8x1xf32>
    %31 = math.sqrt %30 : vector<8x1xf32>
    %32 = vector.broadcast %18 : vector<1x32xf32> to vector<8x32xf32>
    %33 = arith.mulf %32, %25 : vector<8x32xf32>
    %cst_24 = arith.constant 9.99999997E-7 : f32
    %34 = vector.broadcast %cst_24 : f32 to vector<8x1xf32>
    %35 = arith.addf %31, %34 : vector<8x1xf32>
    %36 = tpu.reciprocal %35 {approx = true} : vector<8x1xf32> -> vector<8x1xf32>
    %37 = vector.broadcast %36 : vector<8x1xf32> to vector<8x32xf32>
    %38 = arith.mulf %33, %37 : vector<8x32xf32>
    %39 = vector.broadcast %19 : vector<1x32xf32> to vector<8x32xf32>
    %40 = arith.addf %38, %39 : vector<8x32xf32>
    %c0_25 = arith.constant 0 : index
    %c0_26 = arith.constant 0 : index
    %41 = vector.load %arg11[%c0_25, %c0_26] : memref<32x96xf32, #tpu.memory_space<vmem>>, vector<32x96xf32>
    %cst_27 = arith.constant dense<0.000000e+00> : vector<8x96xf32>
    %42 = tpu.matmul %40, %41, %cst_27 {dimension_numbers = #tpu.dot_dimension_numbers<[1], [0], [0], [1], [0, 0, 1, 1], [], []>} : vector<8x32xf32>, vector<32x96xf32>, vector<8x96xf32> -> vector<8x96xf32>
    %c0_28 = arith.constant 0 : index
    %c0_29 = arith.constant 0 : index
    %43 = vector.load %arg12[%c0_28, %c0_29] : memref<1x96xf32, #tpu.memory_space<vmem>>, vector<1x96xf32>
    %44 = vector.broadcast %43 : vector<1x96xf32> to vector<8x96xf32>
    %45 = arith.addf %42, %44 : vector<8x96xf32>
    %46 = vector.extract_strided_slice %45 {offsets = [0, 0], sizes = [8, 32], strides = [1, 1]} : vector<8x96xf32> to vector<8x32xf32>
    %47 = vector.extract_strided_slice %45 {offsets = [0, 32], sizes = [8, 32], strides = [1, 1]} : vector<8x96xf32> to vector<8x32xf32>
    %48 = vector.extract_strided_slice %45 {offsets = [0, 64], sizes = [8, 32], strides = [1, 1]} : vector<8x96xf32> to vector<8x32xf32>
    %cst_30 = arith.constant 8.000000e+00 : f32
    %49 = math.sqrt %cst_30 : f32
    %cst_31 = arith.constant 1.000000e+00 : f32
    %50 = arith.divf %cst_31, %49 : f32
    %51 = vector.extract_strided_slice %46 {offsets = [0, 0], sizes = [8, 8], strides = [1, 1]} : vector<8x32xf32> to vector<8x8xf32>
    %52 = vector.extract_strided_slice %47 {offsets = [0, 0], sizes = [8, 8], strides = [1, 1]} : vector<8x32xf32> to vector<8x8xf32>
    %53 = vector.extract_strided_slice %48 {offsets = [0, 0], sizes = [8, 8], strides = [1, 1]} : vector<8x32xf32> to vector<8x8xf32>
    %cst_32 = arith.constant dense<0.000000e+00> : vector<8x8xf32>
    %54 = tpu.matmul %51, %52, %cst_32 {dimension_numbers = #tpu.dot_dimension_numbers<[1], [1], [0], [0], [0, 0, 1, 0], [], []>} : vector<8x8xf32>, vector<8x8xf32>, vector<8x8xf32> -> vector<8x8xf32>
    %55 = vector.broadcast %50 : f32 to vector<8x8xf32>
    %56 = arith.mulf %54, %55 : vector<8x8xf32>
    %57 = arith.addf %56, %10 : vector<8x8xf32>
    %cst_33 = arith.constant dense<0xFF800000> : vector<8xf32>
    %58 = vector.multi_reduction <maximumf>, %57, %cst_33 [1] : vector<8x8xf32> to vector<8xf32>
    %59 = vector.shape_cast %58 : vector<8xf32> to vector<8x1xf32>
    %60 = vector.broadcast %59 : vector<8x1xf32> to vector<8x8xf32>
    %61 = arith.subf %57, %60 : vector<8x8xf32>
    %62 = math.exp %61 : vector<8x8xf32>
    %cst_34 = arith.constant dense<0.000000e+00> : vector<8xf32>
    %63 = vector.multi_reduction <add>, %62, %cst_34 [1] : vector<8x8xf32> to vector<8xf32>
    %64 = vector.shape_cast %63 : vector<8xf32> to vector<8x1xf32>
    %65 = tpu.reciprocal %64 {approx = true} : vector<8x1xf32> -> vector<8x1xf32>
    %66 = vector.broadcast %65 : vector<8x1xf32> to vector<8x8xf32>
    %67 = arith.mulf %62, %66 : vector<8x8xf32>
    %cst_35 = arith.constant dense<0.000000e+00> : vector<8x8xf32>
    %68 = tpu.matmul %67, %53, %cst_35 {dimension_numbers = #tpu.dot_dimension_numbers<[1], [0], [0], [1], [0, 0, 1, 1], [], []>} : vector<8x8xf32>, vector<8x8xf32>, vector<8x8xf32> -> vector<8x8xf32>
    %69 = vector.extract_strided_slice %46 {offsets = [0, 8], sizes = [8, 8], strides = [1, 1]} : vector<8x32xf32> to vector<8x8xf32>
    %70 = vector.extract_strided_slice %47 {offsets = [0, 8], sizes = [8, 8], strides = [1, 1]} : vector<8x32xf32> to vector<8x8xf32>
    %71 = vector.extract_strided_slice %48 {offsets = [0, 8], sizes = [8, 8], strides = [1, 1]} : vector<8x32xf32> to vector<8x8xf32>
    %cst_36 = arith.constant dense<0.000000e+00> : vector<8x8xf32>
    %72 = tpu.matmul %69, %70, %cst_36 {dimension_numbers = #tpu.dot_dimension_numbers<[1], [1], [0], [0], [0, 0, 1, 0], [], []>} : vector<8x8xf32>, vector<8x8xf32>, vector<8x8xf32> -> vector<8x8xf32>
    %73 = vector.broadcast %50 : f32 to vector<8x8xf32>
    %74 = arith.mulf %72, %73 : vector<8x8xf32>
    %75 = arith.addf %74, %10 : vector<8x8xf32>
    %cst_37 = arith.constant dense<0xFF800000> : vector<8xf32>
    %76 = vector.multi_reduction <maximumf>, %75, %cst_37 [1] : vector<8x8xf32> to vector<8xf32>
    %77 = vector.shape_cast %76 : vector<8xf32> to vector<8x1xf32>
    %78 = vector.broadcast %77 : vector<8x1xf32> to vector<8x8xf32>
    %79 = arith.subf %75, %78 : vector<8x8xf32>
    %80 = math.exp %79 : vector<8x8xf32>
    %cst_38 = arith.constant dense<0.000000e+00> : vector<8xf32>
    %81 = vector.multi_reduction <add>, %80, %cst_38 [1] : vector<8x8xf32> to vector<8xf32>
    %82 = vector.shape_cast %81 : vector<8xf32> to vector<8x1xf32>
    %83 = tpu.reciprocal %82 {approx = true} : vector<8x1xf32> -> vector<8x1xf32>
    %84 = vector.broadcast %83 : vector<8x1xf32> to vector<8x8xf32>
    %85 = arith.mulf %80, %84 : vector<8x8xf32>
    %cst_39 = arith.constant dense<0.000000e+00> : vector<8x8xf32>
    %86 = tpu.matmul %85, %71, %cst_39 {dimension_numbers = #tpu.dot_dimension_numbers<[1], [0], [0], [1], [0, 0, 1, 1], [], []>} : vector<8x8xf32>, vector<8x8xf32>, vector<8x8xf32> -> vector<8x8xf32>
    %87 = vector.extract_strided_slice %46 {offsets = [0, 16], sizes = [8, 8], strides = [1, 1]} : vector<8x32xf32> to vector<8x8xf32>
    %88 = vector.extract_strided_slice %47 {offsets = [0, 16], sizes = [8, 8], strides = [1, 1]} : vector<8x32xf32> to vector<8x8xf32>
    %89 = vector.extract_strided_slice %48 {offsets = [0, 16], sizes = [8, 8], strides = [1, 1]} : vector<8x32xf32> to vector<8x8xf32>
    %cst_40 = arith.constant dense<0.000000e+00> : vector<8x8xf32>
    %90 = tpu.matmul %87, %88, %cst_40 {dimension_numbers = #tpu.dot_dimension_numbers<[1], [1], [0], [0], [0, 0, 1, 0], [], []>} : vector<8x8xf32>, vector<8x8xf32>, vector<8x8xf32> -> vector<8x8xf32>
    %91 = vector.broadcast %50 : f32 to vector<8x8xf32>
    %92 = arith.mulf %90, %91 : vector<8x8xf32>
    %93 = arith.addf %92, %10 : vector<8x8xf32>
    %cst_41 = arith.constant dense<0xFF800000> : vector<8xf32>
    %94 = vector.multi_reduction <maximumf>, %93, %cst_41 [1] : vector<8x8xf32> to vector<8xf32>
    %95 = vector.shape_cast %94 : vector<8xf32> to vector<8x1xf32>
    %96 = vector.broadcast %95 : vector<8x1xf32> to vector<8x8xf32>
    %97 = arith.subf %93, %96 : vector<8x8xf32>
    %98 = math.exp %97 : vector<8x8xf32>
    %cst_42 = arith.constant dense<0.000000e+00> : vector<8xf32>
    %99 = vector.multi_reduction <add>, %98, %cst_42 [1] : vector<8x8xf32> to vector<8xf32>
    %100 = vector.shape_cast %99 : vector<8xf32> to vector<8x1xf32>
    %101 = tpu.reciprocal %100 {approx = true} : vector<8x1xf32> -> vector<8x1xf32>
    %102 = vector.broadcast %101 : vector<8x1xf32> to vector<8x8xf32>
    %103 = arith.mulf %98, %102 : vector<8x8xf32>
    %cst_43 = arith.constant dense<0.000000e+00> : vector<8x8xf32>
    %104 = tpu.matmul %103, %89, %cst_43 {dimension_numbers = #tpu.dot_dimension_numbers<[1], [0], [0], [1], [0, 0, 1, 1], [], []>} : vector<8x8xf32>, vector<8x8xf32>, vector<8x8xf32> -> vector<8x8xf32>
    %105 = vector.extract_strided_slice %46 {offsets = [0, 24], sizes = [8, 8], strides = [1, 1]} : vector<8x32xf32> to vector<8x8xf32>
    %106 = vector.extract_strided_slice %47 {offsets = [0, 24], sizes = [8, 8], strides = [1, 1]} : vector<8x32xf32> to vector<8x8xf32>
    %107 = vector.extract_strided_slice %48 {offsets = [0, 24], sizes = [8, 8], strides = [1, 1]} : vector<8x32xf32> to vector<8x8xf32>
    %cst_44 = arith.constant dense<0.000000e+00> : vector<8x8xf32>
    %108 = tpu.matmul %105, %106, %cst_44 {dimension_numbers = #tpu.dot_dimension_numbers<[1], [1], [0], [0], [0, 0, 1, 0], [], []>} : vector<8x8xf32>, vector<8x8xf32>, vector<8x8xf32> -> vector<8x8xf32>
    %109 = vector.broadcast %50 : f32 to vector<8x8xf32>
    %110 = arith.mulf %108, %109 : vector<8x8xf32>
    %111 = arith.addf %110, %10 : vector<8x8xf32>
    %cst_45 = arith.constant dense<0xFF800000> : vector<8xf32>
    %112 = vector.multi_reduction <maximumf>, %111, %cst_45 [1] : vector<8x8xf32> to vector<8xf32>
    %113 = vector.shape_cast %112 : vector<8xf32> to vector<8x1xf32>
    %114 = vector.broadcast %113 : vector<8x1xf32> to vector<8x8xf32>
    %115 = arith.subf %111, %114 : vector<8x8xf32>
    %116 = math.exp %115 : vector<8x8xf32>
    %cst_46 = arith.constant dense<0.000000e+00> : vector<8xf32>
    %117 = vector.multi_reduction <add>, %116, %cst_46 [1] : vector<8x8xf32> to vector<8xf32>
    %118 = vector.shape_cast %117 : vector<8xf32> to vector<8x1xf32>
    %119 = tpu.reciprocal %118 {approx = true} : vector<8x1xf32> -> vector<8x1xf32>
    %120 = vector.broadcast %119 : vector<8x1xf32> to vector<8x8xf32>
    %121 = arith.mulf %116, %120 : vector<8x8xf32>
    %cst_47 = arith.constant dense<0.000000e+00> : vector<8x8xf32>
    %122 = tpu.matmul %121, %107, %cst_47 {dimension_numbers = #tpu.dot_dimension_numbers<[1], [0], [0], [1], [0, 0, 1, 1], [], []>} : vector<8x8xf32>, vector<8x8xf32>, vector<8x8xf32> -> vector<8x8xf32>
    %123 = tpu.concatenate %68, %86, %104, %122 in 1 : vector<8x8xf32>, vector<8x8xf32>, vector<8x8xf32>, vector<8x8xf32> -> vector<8x32xf32>
    %c0_48 = arith.constant 0 : index
    %c0_49 = arith.constant 0 : index
    %124 = vector.load %arg13[%c0_48, %c0_49] : memref<32x32xf32, #tpu.memory_space<vmem>>, vector<32x32xf32>
    %cst_50 = arith.constant dense<0.000000e+00> : vector<8x32xf32>
    %125 = tpu.matmul %123, %124, %cst_50 {dimension_numbers = #tpu.dot_dimension_numbers<[1], [0], [0], [1], [0, 0, 1, 1], [], []>} : vector<8x32xf32>, vector<32x32xf32>, vector<8x32xf32> -> vector<8x32xf32>
    %126 = arith.addf %1, %125 : vector<8x32xf32>
    %c0_51 = arith.constant 0 : index
    %c0_52 = arith.constant 0 : index
    %127 = vector.load %arg14[%c0_51, %c0_52] : memref<1x32xf32, #tpu.memory_space<vmem>>, vector<1x32xf32>
    %128 = vector.broadcast %127 : vector<1x32xf32> to vector<8x32xf32>
    %129 = arith.addf %126, %128 : vector<8x32xf32>
    %c0_53 = arith.constant 0 : index
    %c0_54 = arith.constant 0 : index
    %130 = vector.load %arg7[%c0_53, %c0_54] : memref<1x32xf32, #tpu.memory_space<vmem>>, vector<1x32xf32>
    %c0_55 = arith.constant 0 : index
    %c0_56 = arith.constant 0 : index
    %131 = vector.load %arg8[%c0_55, %c0_56] : memref<1x32xf32, #tpu.memory_space<vmem>>, vector<1x32xf32>
    %cst_57 = arith.constant dense<0.000000e+00> : vector<8xf32>
    %132 = vector.multi_reduction <add>, %129, %cst_57 [1] : vector<8x32xf32> to vector<8xf32>
    %133 = vector.shape_cast %132 : vector<8xf32> to vector<8x1xf32>
    %cst_58 = arith.constant 3.200000e+01 : f32
    %134 = vector.broadcast %cst_58 : f32 to vector<8x1xf32>
    %135 = arith.divf %133, %134 : vector<8x1xf32>
    %136 = vector.broadcast %135 : vector<8x1xf32> to vector<8x32xf32>
    %137 = arith.subf %129, %136 : vector<8x32xf32>
    %138 = arith.mulf %137, %137 : vector<8x32xf32>
    %cst_59 = arith.constant dense<0.000000e+00> : vector<8xf32>
    %139 = vector.multi_reduction <add>, %138, %cst_59 [1] : vector<8x32xf32> to vector<8xf32>
    %140 = vector.shape_cast %139 : vector<8xf32> to vector<8x1xf32>
    %cst_60 = arith.constant 3.100000e+01 : f32
    %141 = vector.broadcast %cst_60 : f32 to vector<8x1xf32>
    %142 = arith.divf %140, %141 : vector<8x1xf32>
    %143 = math.sqrt %142 : vector<8x1xf32>
    %144 = vector.broadcast %130 : vector<1x32xf32> to vector<8x32xf32>
    %145 = arith.mulf %144, %137 : vector<8x32xf32>
    %cst_61 = arith.constant 9.99999997E-7 : f32
    %146 = vector.broadcast %cst_61 : f32 to vector<8x1xf32>
    %147 = arith.addf %143, %146 : vector<8x1xf32>
    %148 = tpu.reciprocal %147 {approx = true} : vector<8x1xf32> -> vector<8x1xf32>
    %149 = vector.broadcast %148 : vector<8x1xf32> to vector<8x32xf32>
    %150 = arith.mulf %145, %149 : vector<8x32xf32>
    %151 = vector.broadcast %131 : vector<1x32xf32> to vector<8x32xf32>
    %152 = arith.addf %150, %151 : vector<8x32xf32>
    %c0_62 = arith.constant 0 : index
    %c0_63 = arith.constant 0 : index
    %153 = vector.load %arg15[%c0_62, %c0_63] : memref<32x32xf32, #tpu.memory_space<vmem>>, vector<32x32xf32>
    %cst_64 = arith.constant dense<0.000000e+00> : vector<8x32xf32>
    %154 = tpu.matmul %152, %153, %cst_64 {dimension_numbers = #tpu.dot_dimension_numbers<[1], [0], [0], [1], [0, 0, 1, 1], [], []>} : vector<8x32xf32>, vector<32x32xf32>, vector<8x32xf32> -> vector<8x32xf32>
    %c0_65 = arith.constant 0 : index
    %c0_66 = arith.constant 0 : index
    %155 = vector.load %arg16[%c0_65, %c0_66] : memref<1x32xf32, #tpu.memory_space<vmem>>, vector<1x32xf32>
    %156 = vector.broadcast %155 : vector<1x32xf32> to vector<8x32xf32>
    %157 = arith.addf %154, %156 : vector<8x32xf32>
    %c0_67 = arith.constant 0 : index
    %c0_68 = arith.constant 0 : index
    %158 = vector.load %arg17[%c0_67, %c0_68] : memref<32x64xf32, #tpu.memory_space<vmem>>, vector<32x64xf32>
    %cst_69 = arith.constant dense<0.000000e+00> : vector<8x64xf32>
    %159 = tpu.matmul %3, %158, %cst_69 {dimension_numbers = #tpu.dot_dimension_numbers<[1], [0], [0], [1], [0, 0, 1, 1], [], []>} : vector<8x32xf32>, vector<32x64xf32>, vector<8x64xf32> -> vector<8x64xf32>
    %c0_70 = arith.constant 0 : index
    %c0_71 = arith.constant 0 : index
    %160 = vector.load %arg18[%c0_70, %c0_71] : memref<1x64xf32, #tpu.memory_space<vmem>>, vector<1x64xf32>
    %161 = vector.broadcast %160 : vector<1x64xf32> to vector<8x64xf32>
    %162 = arith.addf %159, %161 : vector<8x64xf32>
    %163 = vector.extract_strided_slice %162 {offsets = [0, 0], sizes = [8, 32], strides = [1, 1]} : vector<8x64xf32> to vector<8x32xf32>
    %164 = vector.extract_strided_slice %162 {offsets = [0, 32], sizes = [8, 32], strides = [1, 1]} : vector<8x64xf32> to vector<8x32xf32>
    %cst_72 = arith.constant 8.000000e+00 : f32
    %165 = math.sqrt %cst_72 : f32
    %cst_73 = arith.constant 1.000000e+00 : f32
    %166 = arith.divf %cst_73, %165 : f32
    %167 = vector.extract_strided_slice %157 {offsets = [0, 0], sizes = [8, 8], strides = [1, 1]} : vector<8x32xf32> to vector<8x8xf32>
    %168 = vector.extract_strided_slice %163 {offsets = [0, 0], sizes = [8, 8], strides = [1, 1]} : vector<8x32xf32> to vector<8x8xf32>
    %169 = vector.extract_strided_slice %164 {offsets = [0, 0], sizes = [8, 8], strides = [1, 1]} : vector<8x32xf32> to vector<8x8xf32>
    %cst_74 = arith.constant dense<0.000000e+00> : vector<8x8xf32>
    %170 = tpu.matmul %167, %168, %cst_74 {dimension_numbers = #tpu.dot_dimension_numbers<[1], [1], [0], [0], [0, 0, 1, 0], [], []>} : vector<8x8xf32>, vector<8x8xf32>, vector<8x8xf32> -> vector<8x8xf32>
    %171 = vector.broadcast %166 : f32 to vector<8x8xf32>
    %172 = arith.mulf %170, %171 : vector<8x8xf32>
    %173 = arith.addf %172, %17 : vector<8x8xf32>
    %cst_75 = arith.constant dense<0xFF800000> : vector<8xf32>
    %174 = vector.multi_reduction <maximumf>, %173, %cst_75 [1] : vector<8x8xf32> to vector<8xf32>
    %175 = vector.shape_cast %174 : vector<8xf32> to vector<8x1xf32>
    %176 = vector.broadcast %175 : vector<8x1xf32> to vector<8x8xf32>
    %177 = arith.subf %173, %176 : vector<8x8xf32>
    %178 = math.exp %177 : vector<8x8xf32>
    %cst_76 = arith.constant dense<0.000000e+00> : vector<8xf32>
    %179 = vector.multi_reduction <add>, %178, %cst_76 [1] : vector<8x8xf32> to vector<8xf32>
    %180 = vector.shape_cast %179 : vector<8xf32> to vector<8x1xf32>
    %181 = tpu.reciprocal %180 {approx = true} : vector<8x1xf32> -> vector<8x1xf32>
    %182 = vector.broadcast %181 : vector<8x1xf32> to vector<8x8xf32>
    %183 = arith.mulf %178, %182 : vector<8x8xf32>
    %cst_77 = arith.constant dense<0.000000e+00> : vector<8x8xf32>
    %184 = tpu.matmul %183, %169, %cst_77 {dimension_numbers = #tpu.dot_dimension_numbers<[1], [0], [0], [1], [0, 0, 1, 1], [], []>} : vector<8x8xf32>, vector<8x8xf32>, vector<8x8xf32> -> vector<8x8xf32>
    %185 = vector.extract_strided_slice %157 {offsets = [0, 8], sizes = [8, 8], strides = [1, 1]} : vector<8x32xf32> to vector<8x8xf32>
    %186 = vector.extract_strided_slice %163 {offsets = [0, 8], sizes = [8, 8], strides = [1, 1]} : vector<8x32xf32> to vector<8x8xf32>
    %187 = vector.extract_strided_slice %164 {offsets = [0, 8], sizes = [8, 8], strides = [1, 1]} : vector<8x32xf32> to vector<8x8xf32>
    %cst_78 = arith.constant dense<0.000000e+00> : vector<8x8xf32>
    %188 = tpu.matmul %185, %186, %cst_78 {dimension_numbers = #tpu.dot_dimension_numbers<[1], [1], [0], [0], [0, 0, 1, 0], [], []>} : vector<8x8xf32>, vector<8x8xf32>, vector<8x8xf32> -> vector<8x8xf32>
    %189 = vector.broadcast %166 : f32 to vector<8x8xf32>
    %190 = arith.mulf %188, %189 : vector<8x8xf32>
    %191 = arith.addf %190, %17 : vector<8x8xf32>
    %cst_79 = arith.constant dense<0xFF800000> : vector<8xf32>
    %192 = vector.multi_reduction <maximumf>, %191, %cst_79 [1] : vector<8x8xf32> to vector<8xf32>
    %193 = vector.shape_cast %192 : vector<8xf32> to vector<8x1xf32>
    %194 = vector.broadcast %193 : vector<8x1xf32> to vector<8x8xf32>
    %195 = arith.subf %191, %194 : vector<8x8xf32>
    %196 = math.exp %195 : vector<8x8xf32>
    %cst_80 = arith.constant dense<0.000000e+00> : vector<8xf32>
    %197 = vector.multi_reduction <add>, %196, %cst_80 [1] : vector<8x8xf32> to vector<8xf32>
    %198 = vector.shape_cast %197 : vector<8xf32> to vector<8x1xf32>
    %199 = tpu.reciprocal %198 {approx = true} : vector<8x1xf32> -> vector<8x1xf32>
    %200 = vector.broadcast %199 : vector<8x1xf32> to vector<8x8xf32>
    %201 = arith.mulf %196, %200 : vector<8x8xf32>
    %cst_81 = arith.constant dense<0.000000e+00> : vector<8x8xf32>
    %202 = tpu.matmul %201, %187, %cst_81 {dimension_numbers = #tpu.dot_dimension_numbers<[1], [0], [0], [1], [0, 0, 1, 1], [], []>} : vector<8x8xf32>, vector<8x8xf32>, vector<8x8xf32> -> vector<8x8xf32>
    %203 = vector.extract_strided_slice %157 {offsets = [0, 16], sizes = [8, 8], strides = [1, 1]} : vector<8x32xf32> to vector<8x8xf32>
    %204 = vector.extract_strided_slice %163 {offsets = [0, 16], sizes = [8, 8], strides = [1, 1]} : vector<8x32xf32> to vector<8x8xf32>
    %205 = vector.extract_strided_slice %164 {offsets = [0, 16], sizes = [8, 8], strides = [1, 1]} : vector<8x32xf32> to vector<8x8xf32>
    %cst_82 = arith.constant dense<0.000000e+00> : vector<8x8xf32>
    %206 = tpu.matmul %203, %204, %cst_82 {dimension_numbers = #tpu.dot_dimension_numbers<[1], [1], [0], [0], [0, 0, 1, 0], [], []>} : vector<8x8xf32>, vector<8x8xf32>, vector<8x8xf32> -> vector<8x8xf32>
    %207 = vector.broadcast %166 : f32 to vector<8x8xf32>
    %208 = arith.mulf %206, %207 : vector<8x8xf32>
    %209 = arith.addf %208, %17 : vector<8x8xf32>
    %cst_83 = arith.constant dense<0xFF800000> : vector<8xf32>
    %210 = vector.multi_reduction <maximumf>, %209, %cst_83 [1] : vector<8x8xf32> to vector<8xf32>
    %211 = vector.shape_cast %210 : vector<8xf32> to vector<8x1xf32>
    %212 = vector.broadcast %211 : vector<8x1xf32> to vector<8x8xf32>
    %213 = arith.subf %209, %212 : vector<8x8xf32>
    %214 = math.exp %213 : vector<8x8xf32>
    %cst_84 = arith.constant dense<0.000000e+00> : vector<8xf32>
    %215 = vector.multi_reduction <add>, %214, %cst_84 [1] : vector<8x8xf32> to vector<8xf32>
    %216 = vector.shape_cast %215 : vector<8xf32> to vector<8x1xf32>
    %217 = tpu.reciprocal %216 {approx = true} : vector<8x1xf32> -> vector<8x1xf32>
    %218 = vector.broadcast %217 : vector<8x1xf32> to vector<8x8xf32>
    %219 = arith.mulf %214, %218 : vector<8x8xf32>
    %cst_85 = arith.constant dense<0.000000e+00> : vector<8x8xf32>
    %220 = tpu.matmul %219, %205, %cst_85 {dimension_numbers = #tpu.dot_dimension_numbers<[1], [0], [0], [1], [0, 0, 1, 1], [], []>} : vector<8x8xf32>, vector<8x8xf32>, vector<8x8xf32> -> vector<8x8xf32>
    %221 = vector.extract_strided_slice %157 {offsets = [0, 24], sizes = [8, 8], strides = [1, 1]} : vector<8x32xf32> to vector<8x8xf32>
    %222 = vector.extract_strided_slice %163 {offsets = [0, 24], sizes = [8, 8], strides = [1, 1]} : vector<8x32xf32> to vector<8x8xf32>
    %223 = vector.extract_strided_slice %164 {offsets = [0, 24], sizes = [8, 8], strides = [1, 1]} : vector<8x32xf32> to vector<8x8xf32>
    %cst_86 = arith.constant dense<0.000000e+00> : vector<8x8xf32>
    %224 = tpu.matmul %221, %222, %cst_86 {dimension_numbers = #tpu.dot_dimension_numbers<[1], [1], [0], [0], [0, 0, 1, 0], [], []>} : vector<8x8xf32>, vector<8x8xf32>, vector<8x8xf32> -> vector<8x8xf32>
    %225 = vector.broadcast %166 : f32 to vector<8x8xf32>
    %226 = arith.mulf %224, %225 : vector<8x8xf32>
    %227 = arith.addf %226, %17 : vector<8x8xf32>
    %cst_87 = arith.constant dense<0xFF800000> : vector<8xf32>
    %228 = vector.multi_reduction <maximumf>, %227, %cst_87 [1] : vector<8x8xf32> to vector<8xf32>
    %229 = vector.shape_cast %228 : vector<8xf32> to vector<8x1xf32>
    %230 = vector.broadcast %229 : vector<8x1xf32> to vector<8x8xf32>
    %231 = arith.subf %227, %230 : vector<8x8xf32>
    %232 = math.exp %231 : vector<8x8xf32>
    %cst_88 = arith.constant dense<0.000000e+00> : vector<8xf32>
    %233 = vector.multi_reduction <add>, %232, %cst_88 [1] : vector<8x8xf32> to vector<8xf32>
    %234 = vector.shape_cast %233 : vector<8xf32> to vector<8x1xf32>
    %235 = tpu.reciprocal %234 {approx = true} : vector<8x1xf32> -> vector<8x1xf32>
    %236 = vector.broadcast %235 : vector<8x1xf32> to vector<8x8xf32>
    %237 = arith.mulf %232, %236 : vector<8x8xf32>
    %cst_89 = arith.constant dense<0.000000e+00> : vector<8x8xf32>
    %238 = tpu.matmul %237, %223, %cst_89 {dimension_numbers = #tpu.dot_dimension_numbers<[1], [0], [0], [1], [0, 0, 1, 1], [], []>} : vector<8x8xf32>, vector<8x8xf32>, vector<8x8xf32> -> vector<8x8xf32>
    %239 = tpu.concatenate %184, %202, %220, %238 in 1 : vector<8x8xf32>, vector<8x8xf32>, vector<8x8xf32>, vector<8x8xf32> -> vector<8x32xf32>
    %c0_90 = arith.constant 0 : index
    %c0_91 = arith.constant 0 : index
    %240 = vector.load %arg19[%c0_90, %c0_91] : memref<32x32xf32, #tpu.memory_space<vmem>>, vector<32x32xf32>
    %cst_92 = arith.constant dense<0.000000e+00> : vector<8x32xf32>
    %241 = tpu.matmul %239, %240, %cst_92 {dimension_numbers = #tpu.dot_dimension_numbers<[1], [0], [0], [1], [0, 0, 1, 1], [], []>} : vector<8x32xf32>, vector<32x32xf32>, vector<8x32xf32> -> vector<8x32xf32>
    %242 = arith.addf %129, %241 : vector<8x32xf32>
    %c0_93 = arith.constant 0 : index
    %c0_94 = arith.constant 0 : index
    %243 = vector.load %arg20[%c0_93, %c0_94] : memref<1x32xf32, #tpu.memory_space<vmem>>, vector<1x32xf32>
    %244 = vector.broadcast %243 : vector<1x32xf32> to vector<8x32xf32>
    %245 = arith.addf %242, %244 : vector<8x32xf32>
    %c0_95 = arith.constant 0 : index
    %c0_96 = arith.constant 0 : index
    %246 = vector.load %arg9[%c0_95, %c0_96] : memref<1x32xf32, #tpu.memory_space<vmem>>, vector<1x32xf32>
    %c0_97 = arith.constant 0 : index
    %c0_98 = arith.constant 0 : index
    %247 = vector.load %arg10[%c0_97, %c0_98] : memref<1x32xf32, #tpu.memory_space<vmem>>, vector<1x32xf32>
    %cst_99 = arith.constant dense<0.000000e+00> : vector<8xf32>
    %248 = vector.multi_reduction <add>, %245, %cst_99 [1] : vector<8x32xf32> to vector<8xf32>
    %249 = vector.shape_cast %248 : vector<8xf32> to vector<8x1xf32>
    %cst_100 = arith.constant 3.200000e+01 : f32
    %250 = vector.broadcast %cst_100 : f32 to vector<8x1xf32>
    %251 = arith.divf %249, %250 : vector<8x1xf32>
    %252 = vector.broadcast %251 : vector<8x1xf32> to vector<8x32xf32>
    %253 = arith.subf %245, %252 : vector<8x32xf32>
    %254 = arith.mulf %253, %253 : vector<8x32xf32>
    %cst_101 = arith.constant dense<0.000000e+00> : vector<8xf32>
    %255 = vector.multi_reduction <add>, %254, %cst_101 [1] : vector<8x32xf32> to vector<8xf32>
    %256 = vector.shape_cast %255 : vector<8xf32> to vector<8x1xf32>
    %cst_102 = arith.constant 3.100000e+01 : f32
    %257 = vector.broadcast %cst_102 : f32 to vector<8x1xf32>
    %258 = arith.divf %256, %257 : vector<8x1xf32>
    %259 = math.sqrt %258 : vector<8x1xf32>
    %260 = vector.broadcast %246 : vector<1x32xf32> to vector<8x32xf32>
    %261 = arith.mulf %260, %253 : vector<8x32xf32>
    %cst_103 = arith.constant 9.99999997E-7 : f32
    %262 = vector.broadcast %cst_103 : f32 to vector<8x1xf32>
    %263 = arith.addf %259, %262 : vector<8x1xf32>
    %264 = tpu.reciprocal %263 {approx = true} : vector<8x1xf32> -> vector<8x1xf32>
    %265 = vector.broadcast %264 : vector<8x1xf32> to vector<8x32xf32>
    %266 = arith.mulf %261, %265 : vector<8x32xf32>
    %267 = vector.broadcast %247 : vector<1x32xf32> to vector<8x32xf32>
    %268 = arith.addf %266, %267 : vector<8x32xf32>
    %c0_104 = arith.constant 0 : index
    %c0_105 = arith.constant 0 : index
    %269 = vector.load %arg21[%c0_104, %c0_105] : memref<32x64xf32, #tpu.memory_space<vmem>>, vector<32x64xf32>
    %cst_106 = arith.constant dense<0.000000e+00> : vector<8x64xf32>
    %270 = tpu.matmul %268, %269, %cst_106 {dimension_numbers = #tpu.dot_dimension_numbers<[1], [0], [0], [1], [0, 0, 1, 1], [], []>} : vector<8x32xf32>, vector<32x64xf32>, vector<8x64xf32> -> vector<8x64xf32>
    %c0_107 = arith.constant 0 : index
    %c0_108 = arith.constant 0 : index
    %271 = vector.load %arg22[%c0_107, %c0_108] : memref<1x64xf32, #tpu.memory_space<vmem>>, vector<1x64xf32>
    %272 = vector.broadcast %271 : vector<1x64xf32> to vector<8x64xf32>
    %273 = arith.addf %270, %272 : vector<8x64xf32>
    %cst_109 = arith.constant 0.000000e+00 : f32
    %274 = vector.broadcast %cst_109 : f32 to vector<8x64xf32>
    %275 = arith.maximumf %273, %274 : vector<8x64xf32>
    %c0_110 = arith.constant 0 : index
    %c0_111 = arith.constant 0 : index
    %276 = vector.load %arg23[%c0_110, %c0_111] : memref<64x32xf32, #tpu.memory_space<vmem>>, vector<64x32xf32>
    %cst_112 = arith.constant dense<0.000000e+00> : vector<8x32xf32>
    %277 = tpu.matmul %275, %276, %cst_112 {dimension_numbers = #tpu.dot_dimension_numbers<[1], [0], [0], [1], [0, 0, 1, 1], [], []>} : vector<8x64xf32>, vector<64x32xf32>, vector<8x32xf32> -> vector<8x32xf32>
    %278 = arith.addf %245, %277 : vector<8x32xf32>
    %c0_113 = arith.constant 0 : index
    %c0_114 = arith.constant 0 : index
    %279 = vector.load %arg24[%c0_113, %c0_114] : memref<1x32xf32, #tpu.memory_space<vmem>>, vector<1x32xf32>
    %280 = vector.broadcast %279 : vector<1x32xf32> to vector<8x32xf32>
    %281 = arith.addf %278, %280 : vector<8x32xf32>
    %c0_115 = arith.constant 0 : index
    %c0_116 = arith.constant 0 : index
    %c0_117 = arith.constant 0 : index
    %282 = vector.load %arg25[%c0_115, %c0_116, %c0_117] : memref<1x8x32xf32, #tpu.memory_space<vmem>>, vector<1x8x32xf32>
    %283 = vector.shape_cast %282 : vector<1x8x32xf32> to vector<8x32xf32>
    %284 = vector.shape_cast %281 : vector<8x32xf32> to vector<1x8x32xf32>
    tpu.vector_store %arg25[%c0_115, %c0_116, %c0_117], %284 {strides = array<i32>} : memref<1x8x32xf32, #tpu.memory_space<vmem>>, vector<1x8x32xf32>,
    return
  }
  func.func @transform_0(%arg0: i32) -> (i32, i32, i32) {
    %c0_i32 = arith.constant 0 : i32
    %c0_i32_0 = arith.constant 0 : i32
    %c0_i32_1 = arith.constant 0 : i32
    return %arg0, %c0_i32, %c0_i32_0 : i32, i32, i32
  }
  func.func @transform_1(%arg0: i32) -> (i32, i32, i32) {
    %c0_i32 = arith.constant 0 : i32
    %c0_i32_0 = arith.constant 0 : i32
    %c0_i32_1 = arith.constant 0 : i32
    return %arg0, %c0_i32, %c0_i32_0 : i32, i32, i32
  }
  func.func @transform_2(%arg0: i32) -> (i32, i32, i32) {
    %c0_i32 = arith.constant 0 : i32
    %c0_i32_0 = arith.constant 0 : i32
    %c0_i32_1 = arith.constant 0 : i32
    return %arg0, %c0_i32, %c0_i32_0 : i32, i32, i32
  }
  func.func @transform_3(%arg0: i32) -> (i32, i32, i32) {
    %c0_i32 = arith.constant 0 : i32
    %c0_i32_0 = arith.constant 0 : i32
    %c0_i32_1 = arith.constant 0 : i32
    return %arg0, %c0_i32, %c0_i32_0 : i32, i32, i32
  }
  func.func @transform_4(%arg0: i32) -> (i32, i32) {
    %c0_i32 = arith.constant 0 : i32
    %c0_i32_0 = arith.constant 0 : i32
    %c0_i32_1 = arith.constant 0 : i32
    return %c0_i32, %c0_i32_0 : i32, i32
  }
  func.func @transform_5(%arg0: i32) -> (i32, i32) {
    %c0_i32 = arith.constant 0 : i32
    %c0_i32_0 = arith.constant 0 : i32
    %c0_i32_1 = arith.constant 0 : i32
    return %c0_i32, %c0_i32_0 : i32, i32
  }
  func.func @transform_6(%arg0: i32) -> (i32, i32) {
    %c0_i32 = arith.constant 0 : i32
    %c0_i32_0 = arith.constant 0 : i32
    %c0_i32_1 = arith.constant 0 : i32
    return %c0_i32, %c0_i32_0 : i32, i32
  }
  func.func @transform_7(%arg0: i32) -> (i32, i32) {
    %c0_i32 = arith.constant 0 : i32
    %c0_i32_0 = arith.constant 0 : i32
    %c0_i32_1 = arith.constant 0 : i32
    return %c0_i32, %c0_i32_0 : i32, i32
  }
  func.func @transform_8(%arg0: i32) -> (i32, i32) {
    %c0_i32 = arith.constant 0 : i32
    %c0_i32_0 = arith.constant 0 : i32
    %c0_i32_1 = arith.constant 0 : i32
    return %c0_i32, %c0_i32_0 : i32, i32
  }
  func.func @transform_9(%arg0: i32) -> (i32, i32) {
    %c0_i32 = arith.constant 0 : i32
    %c0_i32_0 = arith.constant 0 : i32
    %c0_i32_1 = arith.constant 0 : i32
    return %c0_i32, %c0_i32_0 : i32, i32
  }
  func.func @transform_10(%arg0: i32) -> (i32, i32) {
    %c0_i32 = arith.constant 0 : i32
    %c0_i32_0 = arith.constant 0 : i32
    %c0_i32_1 = arith.constant 0 : i32
    return %c0_i32, %c0_i32_0 : i32, i32
  }
  func.func @transform_11(%arg0: i32) -> (i32, i32) {
    %c0_i32 = arith.constant 0 : i32
    %c0_i32_0 = arith.constant 0 : i32
    %c0_i32_1 = arith.constant 0 : i32
    return %c0_i32, %c0_i32_0 : i32, i32
  }
  func.func @transform_12(%arg0: i32) -> (i32, i32) {
    %c0_i32 = arith.constant 0 : i32
    %c0_i32_0 = arith.constant 0 : i32
    %c0_i32_1 = arith.constant 0 : i32
    return %c0_i32, %c0_i32_0 : i32, i32
  }
  func.func @transform_13(%arg0: i32) -> (i32, i32) {
    %c0_i32 = arith.constant 0 : i32
    %c0_i32_0 = arith.constant 0 : i32
    %c0_i32_1 = arith.constant 0 : i32
    return %c0_i32, %c0_i32_0 : i32, i32
  }
  func.func @transform_14(%arg0: i32) -> (i32, i32) {
    %c0_i32 = arith.constant 0 : i32
    %c0_i32_0 = arith.constant 0 : i32
    %c0_i32_1 = arith.constant 0 : i32
    return %c0_i32, %c0_i32_0 : i32, i32
  }
  func.func @transform_15(%arg0: i32) -> (i32, i32) {
    %c0_i32 = arith.constant 0 : i32
    %c0_i32_0 = arith.constant 0 : i32
    %c0_i32_1 = arith.constant 0 : i32
    return %c0_i32, %c0_i32_0 : i32, i32
  }
  func.func @transform_16(%arg0: i32) -> (i32, i32) {
    %c0_i32 = arith.constant 0 : i32
    %c0_i32_0 = arith.constant 0 : i32
    %c0_i32_1 = arith.constant 0 : i32
    return %c0_i32, %c0_i32_0 : i32, i32
  }
  func.func @transform_17(%arg0: i32) -> (i32, i32) {
    %c0_i32 = arith.constant 0 : i32
    %c0_i32_0 = arith.constant 0 : i32
    %c0_i32_1 = arith.constant 0 : i32
    return %c0_i32, %c0_i32_0 : i32, i32
  }
  func.func @transform_18(%arg0: i32) -> (i32, i32) {
    %c0_i32 = arith.constant 0 : i32
    %c0_i32_0 = arith.constant 0 : i32
    %c0_i32_1 = arith.constant 0 : i32
    return %c0_i32, %c0_i32_0 : i32, i32
  }
  func.func @transform_19(%arg0: i32) -> (i32, i32) {
    %c0_i32 = arith.constant 0 : i32
    %c0_i32_0 = arith.constant 0 : i32
    %c0_i32_1 = arith.constant 0 : i32
    return %c0_i32, %c0_i32_0 : i32, i32
  }
  func.func @transform_20(%arg0: i32) -> (i32, i32) {
    %c0_i32 = arith.constant 0 : i32
    %c0_i32_0 = arith.constant 0 : i32
    %c0_i32_1 = arith.constant 0 : i32
    return %c0_i32, %c0_i32_0 : i32, i32
  }
  func.func @transform_21(%arg0: i32) -> (i32, i32) {
    %c0_i32 = arith.constant 0 : i32
    %c0_i32_0 = arith.constant 0 : i32
    %c0_i32_1 = arith.constant 0 : i32
    return %c0_i32, %c0_i32_0 : i32, i32
  }
  func.func @transform_22(%arg0: i32) -> (i32, i32) {
    %c0_i32 = arith.constant 0 : i32
    %c0_i32_0 = arith.constant 0 : i32
    %c0_i32_1 = arith.constant 0 : i32
    return %c0_i32, %c0_i32_0 : i32, i32
  }
  func.func @transform_23(%arg0: i32) -> (i32, i32) {
    %c0_i32 = arith.constant 0 : i32
    %c0_i32_0 = arith.constant 0 : i32
    %c0_i32_1 = arith.constant 0 : i32
    return %c0_i32, %c0_i32_0 : i32, i32
  }
  func.func @transform_24(%arg0: i32) -> (i32, i32, i32) {
    %c0_i32 = arith.constant 0 : i32
    %c0_i32_0 = arith.constant 0 : i32
    %c0_i32_1 = arith.constant 0 : i32
    return %arg0, %c0_i32, %c0_i32_0 : i32, i32, i32
  }
}

</mosaic_0001>

<bundles_post_ra>
// kernel: _decoder_layer_forward.1
= control target key start
LH: loop header
LB: loop body
LE: loop exit
PB: predicated region body
PF: predicated region fallthrough
CT: control target
= control target key end

     0   :  { %s4029_s0 = inlined_call_operand.vmem [shape: f32[2,8,32], index: 0, kind: input, shape index: {}]   ;;  %s4030_s1 = inlined_call_operand.vmem [shape: f32[2,8,32], index: 1, kind: input, shape index: {}]   ;;  %s4031_s2 = inlined_call_operand.vmem [shape: f32[2,8,8], index: 2, kind: input, shape index: {}]   ;;  %s4032_s3 = inlined_call_operand.vmem [shape: f32[2,8,8], index: 3, kind: input, shape index: {}]   ;;  %s4033_s4 = inlined_call_operand.vmem [shape: f32[1,32], index: 4, kind: input, shape index: {}]   ;;  %s4034_s5 = inlined_call_operand.vmem [shape: f32[1,32], index: 5, kind: input, shape index: {}]   ;;  %s4035_s6 = inlined_call_operand.vmem [shape: f32[1,32], index: 6, kind: input, shape index: {}]   ;;  %s4036_s7 = inlined_call_operand.vmem [shape: f32[1,32], index: 7, kind: input, shape index: {}]   ;;  %s4037_s8 = inlined_call_operand.vmem [shape: f32[1,32], index: 8, kind: input, shape index: {}]   ;;  %s4038_s9 = inlined_call_operand.vmem [shape: f32[1,32], index: 9, kind: input, shape index: {}]   ;;  %s4039_s10 = inlined_call_operand.vmem [shape: f32[32,96], index: 10, kind: input, shape index: {}]   ;;  %s4040_s11 = inlined_call_operand.vmem [shape: f32[1,96], index: 11, kind: input, shape index: {}]   ;;  %s4041_s12 = inlined_call_operand.vmem [shape: f32[32,32], index: 12, kind: input, shape index: {}]   ;;  %s4042_s13 = inlined_call_operand.vmem [shape: f32[1,32], index: 13, kind: input, shape index: {}]   ;;  %s4043_s14 = inlined_call_operand.vmem [shape: f32[32,32], index: 14, kind: input, shape index: {}]   ;;  %s4044_s15 = inlined_call_operand.vmem [shape: f32[1,32], index: 15, kind: input, shape index: {}]   ;;  %s4045_s16 = inlined_call_operand.vmem [shape: f32[32,64], index: 16, kind: input, shape index: {}]   ;;  %s4046_s17 = inlined_call_operand.vmem [shape: f32[1,64], index: 17, kind: input, shape index: {}]   ;;  %s4047_s18 = inlined_call_operand.vmem [shape: f32[32,32], index: 18, kind: input, shape index: {}]   ;;  %s4048_s19 = inlined_call_operand.vmem [shape: f32[1,32], index: 19, kind: input, shape index: {}]   ;;  %s4049_s20 = inlined_call_operand.vmem [shape: f32[32,64], index: 20, kind: input, shape index: {}]   ;;  %s4050_s21 = inlined_call_operand.vmem [shape: f32[1,64], index: 21, kind: input, shape index: {}]   ;;  %s4051_s22 = inlined_call_operand.vmem [shape: f32[64,32], index: 22, kind: input, shape index: {}]   ;;  %s4052_s23 = inlined_call_operand.vmem [shape: f32[1,32], index: 23, kind: input, shape index: {}]   ;;  %s4053_s24 = inlined_call_operand.hbm [shape: f32[2,8,32], index: 24, kind: output, shape index: {}]  }
   0x1   :  { %4068 = sst [smem:[#allocation7_spill]] %s4029_s0 }
   0x2   :  { %4069 = sst [smem:[#allocation8_spill]] %s4030_s1 }
   0x3   :  { %4070 = sst [smem:[#allocation9_spill]] %s4031_s2 }
   0x4   :  { %4071 = sst [smem:[#allocation10_spill]] %s4032_s3 }
   0x5   :  { %4072 = sst [smem:[#allocation11_spill]] %s4033_s4 }
   0x6   :  { %4073 = sst [smem:[#allocation12_spill]] %s4034_s5 }
   0x7   :  { %4074 = sst [smem:[#allocation13_spill]] %s4035_s6 }
   0x8   :  { %4075 = sst [smem:[#allocation14_spill]] %s4036_s7 }
   0x9   :  { %4076 = sst [smem:[#allocation15_spill]] %s4037_s8 }
   0xa   :  { %4077 = sst [smem:[#allocation16_spill]] %s4038_s9 }
   0xb   :  { %4078 = sst [smem:[#allocation17_spill]] %s4039_s10 }
   0xc   :  { %4079 = sst [smem:[#allocation18_spill]] %s4040_s11 }
   0xd   :  { %4080 = sst [smem:[#allocation19_spill]] %s4041_s12 }
   0xe   :  { %29 = vsyncpa [#allocation3], 0 }
   0xf   :  { %31 = vsyncpa [#allocation3 + $0x1], 0  ;;  %s3575_s5 = smov 0   ;;  %s3577_s26 = smov 0  }
  0x10   :  { %s3579_s27 = smov 0   ;;  %s3581_s28 = smov 0  }
  0x11 LB: > { %4081 = sst [smem:[#allocation5_spill]] %s3427_s27  ;;  %s3596_s6 = sadd.s32 4294967295, %s3431_s28   ;;  %s3431_s28 = sphi %s3581_s28, %s4112_s28   ;;  %s3427_s27 = sphi %s3579_s27, %s4109_s27   ;;  %s3423_s26 = sphi %s3577_s26, %s4111_s26   ;;  %s3419_s5 = sphi %s3575_s5, %s4110_s5  }
  0x12   : > { %s2979_s2 = sadd.s32 4294967294, %s3431_s28   ;;  %s3600_s29 = sadd.s32 1, %s3431_s28  }
  0x13   : > { %s568_s0 = sadd.s32 1, %s3427_s27  ;;  %s565_s7 = ssub.s32 %s3431_s28, %s3600_s29 }
  0x14   : > { %p578_p0 = scmp.ne.s32.totalorder %s3427_s27, %s3423_s26  ;;  %p566_p1 = scmp.eq.s32.totalorder %s565_s7, 0 }
  0x15   : > { %p579_p2 = scmp.eq.s32.totalorder %s3596_s6, 1  ;;  %p584_p3 = scmp.ne.s32.totalorder %s3423_s26, %s3419_s5 }
  0x16   : > { %p585_p4 = scmp.eq.s32.totalorder %s2979_s2, 1  ;;  %p2982_p7 = scmp.ge.s32.totalorder %s3431_s28, 1 }
  0x17   : > { %s3611_s30 = scalar_select %p566_p1, %s3427_s27, %s568_s0  }
  0x18   : > { %p3613_p5 = por %p579_p2, %p578_p0  ;;  %p3617_p6 = por %p585_p4, %p584_p3 }
  0x19   : > { %4082 = sst [smem:[#allocation6_spill]] %s3611_s30  ;;  %p691_p8 = scmp.lt.s32.totalorder %s3431_s28, 3 }
  0x1b   : > { %p692_p9 = pnand %p2982_p7, %p691_p8 }
  0x1c   : > { %p768_p10 = scmp.lt.s32.totalorder (!%p692_p9), %s3596_s6, 1  ;;  %s4085_s0 = sld [smem:[#allocation7_spill]] (!%p692_p9) }
  0x1d   : > { %695 = sbr.rel (%p692_p9) target bundleno = 4099 (0x1003), region = 116  ;;  %s4086_s10 = sld [smem:[#allocation17_spill]] (!%p692_p9) }
  0x1e   : > { %s4089_s11 = sld [smem:[#allocation18_spill]] (!%p692_p9)  ;;  %s4066_s1 = smov (!%p692_p9), 120  }
  0x1f   : > { %s4057_s2 = smov (!%p692_p9), 96   ;;  %s4055_s27 = smov (!%p692_p9), 72  }
  0x20   : > { %s4059_s30 = smov (!%p692_p9), 104   ;;  %s4091_s12 = sld [smem:[#allocation19_spill]] (!%p692_p9) }
  0x21   : > { %s4107_s9 = sld [smem:[#allocation16_spill]] (!%p692_p9) }
  0x22   : > { %s769_s8 = scalar_select %p768_p10, %s3596_s6, 1  ;;  %vm794_vm0 = vcmask 261120   ;;  %v3433_v8 = vmov 0.0   ;;  %vm3434_vm1 = vmmov 0   ;;  %vm918_vm4 = vcmask 64512  }
  0x23   : > { %v834_v7 = vld [vmem:[%s4086_s10 + $0x18] sm:$0xff]  ;;  %3107 = vmatprep.subr.mxu1 %v3433_v8  ;;  %v833_v9 = vld [vmem:[%s4086_s10 + $0x10] sm:$0xff]  ;;  %3115 = vmatprep.mubr.msk.f32.mxu1 %vm3434_vm1, %v3433_v8  ;;  %v832_v10 = vld [vmem:[%s4086_s10 + $0x8] sm:$0xff]  ;;  %vm1596_vm6 = vcmask 130048   ;;  %vm1598_vm7 = vcmask 195584   ;;  %vm2786_vm13 = vcmask 523264  }
  0x24   : > { %s3625_s4 = sshll.u32 %s769_s8, 3  ;;  %3108 = vmatpush3.msra.mxu1 %v834_v7  ;;  %3128 = vmatprep.subr.mxu0 %v3433_v8  ;;  %v831_v11 = vld [vmem:[%s4086_s10] sm:$0xff]  ;;  %s4088_s8 = sld [smem:[#allocation12_spill]] }
  0x25   : > { %s771_s7 = scalar_lea.vmem %s4085_s0, %s3625_s4  ;;  %3109 = vmatprep.subr.mxu1 %v3433_v8  ;;  %3130 = vmatprep.mubr.msk.f32.mxu0 %vm3434_vm1, %v3433_v8  ;;  %s4087_s0 = sld [smem:[#allocation11_spill]]  ;;  %v2990_v26 = vld [vmem:[%s4089_s11] ss:$0 sm:$0xff] }
  0x26   : > { %v3631_v0 = vld [vmem:[%s771_s7] sm:$0xff]  ;;  %3110 = vmatpush3.msra.mxu1 %v833_v9  ;;  %s4056_s7 = smov 80   ;;  %s4064_s10 = smov 112  }
  0x27   : > { %v795_v1 = vsel %vm794_vm0, %v3631_v0, 0.0  ;;  %3111 = vmatprep.subr.mxu1 %v3433_v8  ;;  %s4095_s11 = smov 120  }
  0x28   : > { %796 = vadd.xlane.f32.xlu0 %v795_v1  ;;  %3112 = vmatpush3.msra.mxu1 %v832_v10 }
  0x29   : > { %3113 = vmatprep.subr.mxu1 %v3433_v8 }
  0x2a   : > { %3114 = vmatpush3.msra.mxu1 %v831_v11  ;;  %v2989_v23 = vld [vmem:[%s4088_s8] ss:$0 sm:$0xff]  ;;  %s3445_s8 = smov 56  }
  0x2b   : > { %3118 = vmatprep.subr.mxu1 %v3433_v8  ;;  %v2988_v20 = vld [vmem:[%s4087_s0] ss:$0 sm:$0xff]  ;;  %s4058_s0 = smov 88  }
  0xb1   : > { %v797_v2 = vpop.xlane.xlu0 %796 }
  0xb2   : > { %v799_v3 = vmul.f32 0.03125, %v797_v2 }
  0xb4   : > { %v800_v4 = vsub.f32 %v3631_v0, %v799_v3 }
  0xb6   : > { %v801_v5 = vmul.f32 %v800_v4, %v800_v4  ;;  %v820_v21 = vmul.f32 %v2988_v20, %v800_v4 }
  0xb8   : > { %v802_v6 = vsel %vm794_vm0, %v801_v5, 0.0 }
  0xb9   : > { %803 = vadd.xlane.f32.xlu0 %v802_v6 }
 0x142   : > { %v804_v12 = vpop.xlane.xlu0 %803 }
 0x143   : > { %v806_v13 = vmul.f32 0.032258064, %v804_v12 }
 0x145   : > { %3327 = vrsqrt.f32 %v806_v13  ;;  %vm809_vm2 = vcmp.eq.f32.partialorder %v806_v13, inf  ;;  %v812_v16 = vand.u32 2147483648, %v806_v13  ;;  %vm811_vm3 = vcmp.eq.f32.partialorder %v806_v13, 0.0 }
 0x152   : > { %v3328_v14 = vpop.eup %3327 }
 0x153   : > { %v808_v15 = vmul.f32 %v3328_v14, %v806_v13 }
 0x155   : > { %v810_v17 = vsel %vm809_vm2, %v806_v13, %v808_v15 }
 0x156   : > { %v813_v18 = vsel %vm811_vm3, %v812_v16, %v810_v17 }
 0x157   : > { %v821_v19 = vadd.f32 1e-06, %v813_v18 }
 0x159   : > { %3329 = vrcp.f32 %v821_v19 }
 0x166   : > { %v3330_v22 = vpop.eup %3329 }
 0x167   : > { %v823_v24 = vmul.f32 %v3330_v22, %v820_v21 }
 0x169   : > { %v830_v25 = vadd.f32 %v2989_v23, %v823_v24 }
 0x16b   : > { %3116 = vmatmul.mubr.msk.f32.vlgmr.msra.gmra.mxu1 %vm794_vm0, %v830_v25 }
 0x16c   : > { %3120 = vmatprep.mubr.msk.f32.mxu1 %vm3434_vm1, %v3433_v8 }
 0x22b   : > { %v911_v27 = vpop.f32.mrf.mxu1 }
 0x22c   : > { %v3671_v28 = vadd.f32 %v2990_v26, %v911_v27 }
 0x22d   : > { %v3117_v29 = vpop.f32.mrf.mxu1 }
 0x22e   : > { %1082 = vrot.lane.b32.xlu0 %v3671_v28, %s4066_s1  ;;  %916 = vrot.lane.b32.xlu1 %v3671_v28, %s4057_s2 }
 0x232   : > { %1084 = vrot.lane.b32.xlu1 %v3671_v28, %s4058_s0  ;;  %s4062_s0 = smov 16  }
 0x236   : > { %1251 = vrot.lane.b32.xlu1 %v3671_v28, %s4056_s7  ;;  %s4090_s7 = sld [smem:[#allocation9_spill]] }
 0x23a   : > { %1249 = vrot.lane.b32.xlu1 %v3671_v28, %s4064_s10  ;;  %s4100_s10 = smov 96  }
 0x23c   : > { %s779_s2 = scalar_lea.vmem %s4090_s7, %s3625_s4  ;;  %s3443_s7 = smov 48  }
 0x23d   : > { %v786_v37 = vld [vmem:[%s779_s2] sm:$0xff]  ;;  %s3442_s2 = smov 64  }
 0x23e   : > { %1418 = vrot.lane.b32.xlu1 %v3671_v28, %s4055_s27  ;;  %vm787_vm5 = vcmp.eq.f32.partialorder %v786_v37, 0.0  ;;  %s3444_s27 = smov 40  }
 0x23f   : > { %v788_v39 = vsel %vm787_vm5, -1e+09, %v3433_v8 }
 0x242   : > { %1416 = vrot.lane.b32.xlu1 %v3671_v28, %s4059_s30  ;;  %s4061_s30 = smov 24  }
 0x2a0   : > { %v917_v30 = vpop.permute.xlu1 %916  ;;  %v1083_v32 = vpop.permute.xlu0 %1082 }
 0x2a1   : > { %3119 = vmatpush3.xpose.msk.msra.mxu1 %vm918_vm4, %v917_v30 }
 0x2a2   : > { %3123 = vmatprep.subr.mxu1 %v3433_v8 }
 0x2a4   : > { %3121 = vmatmul.mubr.msk.f32.vlgmr.msra.gmra.mxu1 %vm918_vm4, %v3671_v28  ;;  %v1085_v31 = vpop.permute.xlu1 %1084 }
 0x2a5   : > { %3129 = vmatpush3.xpose.msk.msra.mxu0 %vm918_vm4, %v1085_v31  ;;  %3125 = vmatprep.mubr.msk.f32.mxu1 %vm3434_vm1, %v3433_v8 }
 0x2a6   : > { %3138 = vmatprep.subr.mxu0 %v3433_v8 }
 0x2a8   : > { %3131 = vmatmul.mubr.msk.f32.vlgmr.msra.gmra.mxu0 %vm918_vm4, %v1083_v32  ;;  %v1252_v33 = vpop.permute.xlu1 %1251 }
 0x2a9   : > { %3139 = vmatpush3.xpose.msk.msra.mxu0 %vm918_vm4, %v1252_v33  ;;  %3140 = vmatprep.mubr.msk.f32.mxu0 %vm3434_vm1, %v3433_v8  ;;  %v1603_v33 = vld [vmem:[%s4091_s12 + $0x18] sm:$0xff] }
 0x2aa   : > { %3148 = vmatprep.subr.mxu0 %v3433_v8 }
 0x2ac   : > { %v1250_v34 = vpop.permute.xlu1 %1249 }
 0x2ad   : > { %3141 = vmatmul.mubr.msk.f32.vlgmr.msra.gmra.mxu0 %vm918_vm4, %v1250_v34  ;;  %v1602_v34 = vld [vmem:[%s4091_s12 + $0x10] sm:$0xff] }
 0x2ae   : > { %3150 = vmatprep.mubr.msk.f32.mxu0 %vm3434_vm1, %v3433_v8 }
 0x2b0   : > { %v1419_v35 = vpop.permute.xlu1 %1418 }
 0x2b1   : > { %3149 = vmatpush3.xpose.msk.msra.mxu0 %vm918_vm4, %v1419_v35 }
 0x2b2   : > { %3158 = vmatprep.subr.mxu0 %v3433_v8 }
 0x2b4   : > { %v1417_v36 = vpop.permute.xlu1 %1416 }
 0x2b5   : > { %3151 = vmatmul.mubr.msk.f32.vlgmr.msra.gmra.mxu0 %vm918_vm4, %v1417_v36  ;;  %v1601_v36 = vld [vmem:[%s4091_s12 + $0x8] sm:$0xff] }
 0x2b6   : > { %3166 = vmatprep.mubr.msk.f32.mxu0 %vm3434_vm1, %v3433_v8  ;;  %3159 = vmatpush3.msra.mxu0 %v1603_v33 }
 0x2b7   : > { %3160 = vmatprep.subr.mxu0 %v3433_v8 }
 0x2b8   : > { %3161 = vmatpush3.msra.mxu0 %v1602_v34 }
 0x2b9   : > { %3162 = vmatprep.subr.mxu0 %v3433_v8 }
 0x2ba   : > { %3163 = vmatpush3.msra.mxu0 %v1601_v36 }
 0x2bb   : > { %3164 = vmatprep.subr.mxu0 %v3433_v8 }
 0x364   : > { %v989_v38 = vpop.f32.mrf.mxu1 }
 0x365   : > { %v993_v40 = vmul.f32 0.35355338, %v989_v38  ;;  %v1600_v38 = vld [vmem:[%s4091_s12] sm:$0xff]  ;;  %s4102_s12 = smov 72  }
 0x366   : > { %v3122_v41 = vpop.f32.mrf.mxu1  ;;  %3165 = vmatpush3.msra.mxu0 %v1600_v38 }
 0x367   : > { %v994_v42 = vadd.f32 %v993_v40, %v788_v39  ;;  %3180 = vmatprep.subr.mxu0 %v3433_v8 }
 0x368   : > { %v1156_v43 = vpop.f32.mrf.mxu0 }
 0x369   : > { %v1160_v44 = vmul.f32 0.35355338, %v1156_v43  ;;  %v995_v45 = vsel %vm918_vm4, %v994_v42, -inf }
 0x36a   : > { %v3132_v46 = vpop.f32.mrf.mxu0  ;;  %996 = vmax.xlane.f32.xlu1 %v995_v45 }
 0x36b   : > { %v1161_v47 = vadd.f32 %v1160_v44, %v788_v39 }
 0x36d   : > { %v1323_v48 = vpop.f32.mrf.mxu0  ;;  %v1162_v49 = vsel %vm918_vm4, %v1161_v47, -inf }
 0x36e   : > { %v1327_v50 = vmul.f32 0.35355338, %v1323_v48  ;;  %1163 = vmax.xlane.f32.xlu0 %v1162_v49 }
 0x36f   : > { %v3142_v51 = vpop.f32.mrf.mxu0 }
 0x370   : > { %v1328_v52 = vadd.f32 %v1327_v50, %v788_v39 }
 0x372   : > { %v1329_v53 = vsel %vm918_vm4, %v1328_v52, -inf }
 0x373   : > { %1330 = vmax.xlane.f32.xlu1 %v1329_v53 }
 0x375   : > { %v1490_v54 = vpop.f32.mrf.mxu0 }
 0x376   : > { %v1494_v55 = vmul.f32 0.35355338, %v1490_v54 }
 0x377   : > { %v3152_v56 = vpop.f32.mrf.mxu0 }
 0x378   : > { %v1495_v57 = vadd.f32 %v1494_v55, %v788_v39 }
 0x37a   : > { %v1496_v58 = vsel %vm918_vm4, %v1495_v57, -inf }
 0x37b   : > { %1497 = vmax.xlane.f32.xlu0 %v1496_v58 }
 0x384   : > { %1006 = vrot.lane.b32.xlu1 %v3671_v28, %s3442_s2 }
 0x3f3   : > { %v997_v59 = vpop.xlane.xlu1 %996 }
 0x3f4   : > { %v998_v60 = vsub.f32 %v994_v42, %v997_v59 }
 0x3f6   : > { %v999_v61 = vmul.f32 1.442695, %v998_v60 }
 0x3f7   : > { %v1164_v62 = vpop.xlane.xlu0 %1163 }
 0x3f8   : > { %3331 = vpow2.f32 %v999_v61  ;;  %v1165_v63 = vsub.f32 %v1161_v47, %v1164_v62  ;;  %v1808_v62 = vld [vmem:[%s4045_s16 + $0x10] sm:$0xff] }
 0x3fa   : > { %v1166_v1 = vmul.f32 1.442695, %v1165_v63  ;;  %v1725_v63 = vld [vmem:[%s4043_s14 + $0x18] sm:$0xff] }
 0x3fc   : > { %3333 = vpow2.f32 %v1166_v1  ;;  %v1331_v2 = vpop.xlane.xlu1 %1330  ;;  %v1724_v1 = vld [vmem:[%s4043_s14 + $0x10] sm:$0xff] }
 0x3fd   : > { %v1332_v3 = vsub.f32 %v1328_v52, %v1331_v2  ;;  %v3005_v52 = vld [vmem:[%s4042_s13] ss:$0 sm:$0xff]  ;;  %v1807_v2 = vld [vmem:[%s4045_s16 + $0x8] sm:$0xff] }
 0x3ff   : > { %v1333_v4 = vmul.f32 1.442695, %v1332_v3  ;;  %v1723_v3 = vld [vmem:[%s4043_s14 + $0x8] sm:$0xff] }
 0x400   : > { %v1007_v5 = vpop.permute.xlu1 %1006 }
 0x401   : > { %3335 = vpow2.f32 %v1333_v4  ;;  %3124 = vmatpush3.msra.mxu1 %v1007_v5  ;;  %v1806_v4 = vld [vmem:[%s4045_s16] sm:$0xff] }
 0x402   : > { %3133 = vmatprep.subr.mxu1 %v3433_v8  ;;  %v1722_v5 = vld [vmem:[%s4043_s14] sm:$0xff] }
 0x404   : > { %v1498_v6 = vpop.xlane.xlu0 %1497 }
 0x405   : > { %v3332_v7 = vpop.eup %3331  ;;  %v1499_v9 = vsub.f32 %v1495_v57, %v1498_v6 }
 0x406   : > { %v1001_v10 = vsel %vm918_vm4, %v3332_v7, 0.0 }
 0x407   : > { %v1500_v11 = vmul.f32 1.442695, %v1499_v9  ;;  %1002 = vadd.xlane.f32.xlu1 %v1001_v10 }
 0x409   : > { %v3334_v12 = vpop.eup %3333  ;;  %3337 = vpow2.f32 %v1500_v11 }
 0x40a   : > { %v1168_v13 = vsel %vm918_vm4, %v3334_v12, 0.0 }
 0x40b   : > { %1169 = vadd.xlane.f32.xlu0 %v1168_v13 }
 0x40e   : > { %v3336_v14 = vpop.eup %3335 }
 0x40f   : > { %v1335_v15 = vsel %vm918_vm4, %v3336_v14, 0.0 }
 0x410   : > { %1336 = vadd.xlane.f32.xlu1 %v1335_v15 }
 0x416   : > { %v3338_v16 = vpop.eup %3337 }
 0x417   : > { %v1502_v17 = vsel %vm918_vm4, %v3338_v16, 0.0 }
 0x418   : > { %1503 = vadd.xlane.f32.xlu0 %v1502_v17 }
 0x421   : > { %1340 = vrot.lane.b32.xlu1 %v3671_v28, %s3443_s7  ;;  %s4096_s7 = smov 112  }
 0x425   : > { %1507 = vrot.lane.b32.xlu1 %v3671_v28, %s3444_s27  ;;  %s4063_s27 = smov 8  }
 0x42e   : > { %1173 = vrot.lane.b32.xlu0 %v3671_v28, %s3445_s8  ;;  %s4092_s8 = sld [smem:[#allocation8_spill]] }
 0x434   : > { %s775_s2 = scalar_lea.vmem %s4092_s8, %s3625_s4  ;;  %s4093_s8 = sld [smem:[#allocation13_spill]] }
 0x435   : > { %v785_v6 = vld [vmem:[%s775_s2] sm:$0xff] }
 0x490   : > { %v1003_v18 = vpop.xlane.xlu1 %1002 }
 0x491   : > { %3339 = vrcp.f32 %v1003_v18 }
 0x494   : > { %v1170_v19 = vpop.xlane.xlu0 %1169 }
 0x495   : > { %3341 = vrcp.f32 %v1170_v19 }
 0x499   : > { %v1337_v20 = vpop.xlane.xlu1 %1336 }
 0x49a   : > { %3343 = vrcp.f32 %v1337_v20 }
 0x49d   : > { %v1341_v25 = vpop.permute.xlu1 %1340 }
 0x49e   : > { %v3340_v21 = vpop.eup %3339 }
 0x49f   : > { %v1005_v22 = vmul.f32 %v3340_v21, %v3332_v7 }
 0x4a1   : > { %v1504_v23 = vpop.xlane.xlu0 %1503  ;;  %3126 = vmatmul.mubr.msk.f32.vlgmr.msra.gmra.mxu1 %vm918_vm4, %v1005_v22  ;;  %v1508_v30 = vpop.permute.xlu1 %1507  ;;  %v3010_v22 = vld [vmem:[%s4046_s17] ss:$0 sm:$0xff] }
 0x4a2   : > { %v3342_v24 = vpop.eup %3341  ;;  %3345 = vrcp.f32 %v1504_v23  ;;  %3135 = vmatprep.mubr.msk.f32.mxu1 %vm3434_vm1, %v3433_v8 }
 0x4a3   : > { %v1172_v27 = vmul.f32 %v3342_v24, %v3334_v12 }
 0x4a5   : > { %v1174_v26 = vpop.permute.xlu0 %1173 }
 0x4a6   : > { %3134 = vmatpush3.msra.mxu1 %v1174_v26 }
 0x4a7   : > { %v3344_v28 = vpop.eup %3343  ;;  %3136 = vmatmul.mubr.msk.f32.vlgmr.msra.gmra.mxu1 %vm918_vm4, %v1172_v27  ;;  %3143 = vmatprep.subr.mxu1 %v3433_v8  ;;  %v3008_v27 = vld [vmem:[%s4044_s15] ss:$0 sm:$0xff] }
 0x4a8   : > { %3144 = vmatpush3.msra.mxu1 %v1341_v25  ;;  %3145 = vmatprep.mubr.msk.f32.mxu1 %vm3434_vm1, %v3433_v8  ;;  %v1339_v29 = vmul.f32 %v3344_v28, %v3336_v14 }
 0x4a9   : > { %3153 = vmatprep.subr.mxu1 %v3433_v8 }
 0x4ab   : > { %3146 = vmatmul.mubr.msk.f32.vlgmr.msra.gmra.mxu1 %vm918_vm4, %v1339_v29 }
 0x4ac   : > { %3154 = vmatpush3.msra.mxu1 %v1508_v30  ;;  %3155 = vmatprep.mubr.msk.f32.mxu1 %vm3434_vm1, %v3433_v8 }
 0x4ad   : > { %3169 = vmatprep.subr.mxu1 %v3433_v8 }
 0x4af   : > { %v3346_v31 = vpop.eup %3345 }
 0x4b0   : > { %v1506_v32 = vmul.f32 %v3346_v31, %v3338_v16  ;;  %v3006_v16 = vld [vmem:[%s4093_s8] ss:$0 sm:$0xff]  ;;  %s4097_s8 = smov 104  }
 0x4b2   : > { %3156 = vmatmul.mubr.msk.f32.vlgmr.msra.gmra.mxu1 %vm918_vm4, %v1506_v32 }
 0x4b3   : > { %3177 = vmatprep.mubr.msk.f32.mxu1 %vm3434_vm1, %v3433_v8  ;;  %3170 = vmatpush3.msra.mxu1 %v1725_v63 }
 0x4b4   : > { %3171 = vmatprep.subr.mxu1 %v3433_v8 }
 0x4b5   : > { %3172 = vmatpush3.msra.mxu1 %v1724_v1 }
 0x4b6   : > { %3173 = vmatprep.subr.mxu1 %v3433_v8 }
 0x4b7   : > { %3174 = vmatpush3.msra.mxu1 %v1723_v3 }
 0x4b8   : > { %3175 = vmatprep.subr.mxu1 %v3433_v8 }
 0x4b9   : > { %3176 = vmatpush3.msra.mxu1 %v1722_v5 }
 0x4ba   : > { %3191 = vmatprep.subr.mxu1 %v3433_v8 }
 0x561   : > { %v1078_v35 = vpop.f32.mrf.mxu1 }
 0x563   : > { %v3127_v37 = vpop.f32.mrf.mxu1 }
 0x567   : > { %v1245_v39 = vpop.f32.mrf.mxu1 }
 0x568   : > { %1584 = vrot.lane.b32.xlu0 %v1245_v39, %s4063_s27  ;;  %s3033_s27 = sshll.u32 %s3596_s6, 7  ;;  %s3449_s6 = smov [#allocation2]  }
 0x569   : > { %v3137_v40 = vpop.f32.mrf.mxu1 }
 0x56b   : > { %v1412_v41 = vpop.f32.mrf.mxu1 }
 0x56c   : > { %1588 = vrot.lane.b32.xlu1 %v1412_v41, %s4062_s0  ;;  %s4094_s0 = sld [smem:[#allocation14_spill]] }
 0x56d   : > { %v3147_v42 = vpop.f32.mrf.mxu1 }
 0x572   : > { %v1579_v43 = vpop.f32.mrf.mxu1  ;;  %v3007_v19 = vld [vmem:[%s4094_s0] ss:$0 sm:$0xff]  ;;  %s4098_s0 = sld [smem:[#allocation10_spill]] }
 0x573   : > { %1592 = vrot.lane.b32.xlu0 %v1579_v43, %s4061_s30  ;;  %s4106_s30 = sld [smem:[#allocation15_spill]] }
 0x574   : > { %v3157_v44 = vpop.f32.mrf.mxu1 }
 0x578   : > { %s783_s1 = scalar_lea.vmem %s4098_s0, %s3625_s4  ;;  %s4099_s4 = smov 88  }
 0x579   : > { %v789_v36 = vld [vmem:[%s783_s1] sm:$0xff] }
 0x57a   : > { %vm790_vm10 = vcmp.eq.f32.partialorder %v789_v36, 0.0  ;;  %v2572_v36 = vld [vmem:[%s4047_s18 + $0x8] sm:$0xff] }
 0x57b   : > { %v791_v38 = vsel %vm790_vm10, -1e+09, %v3433_v8 }
 0x5da   : > { %v1585_v45 = vpop.permute.xlu0 %1584 }
 0x5db   : > { %v1595_v47 = vsel %vm918_vm4, %v1078_v35, %v1585_v45 }
 0x5de   : > { %v1589_v46 = vpop.permute.xlu1 %1588 }
 0x5df   : > { %v1597_v48 = vsel %vm1596_vm6, %v1595_v47, %v1589_v46 }
 0x5e5   : > { %v1593_v49 = vpop.permute.xlu0 %1592 }
 0x5e6   : > { %v1599_v50 = vsel %vm1598_vm7, %v1597_v48, %v1593_v49 }
 0x5e7   : > { %3167 = vmatmul.mubr.msk.f32.vlgmr.msra.gmra.mxu0 %vm794_vm0, %v1599_v50 }
 0x5e8   : > { %3188 = vmatprep.mubr.msk.f32.mxu0 %vm3434_vm1, %v3433_v8 }
 0x6a7   : > { %v1673_v51 = vpop.f32.mrf.mxu0 }
 0x6a8   : > { %v1677_v53 = vadd.f32 %v1673_v51, %v3631_v0  ;;  %v1809_v0 = vld [vmem:[%s4045_s16 + $0x18] sm:$0xff] }
 0x6a9   : > { %v3168_v54 = vpop.f32.mrf.mxu0  ;;  %3181 = vmatpush3.msra.mxu0 %v1809_v0 }
 0x6aa   : > { %v3770_v55 = vadd.f32 %v3005_v52, %v1677_v53  ;;  %3182 = vmatprep.subr.mxu0 %v3433_v8 }
 0x6ab   : > { %3183 = vmatpush3.msra.mxu0 %v1808_v62 }
 0x6ac   : > { %v1688_v56 = vsel %vm794_vm0, %v3770_v55, 0.0  ;;  %3184 = vmatprep.subr.mxu0 %v3433_v8 }
 0x6ad   : > { %1689 = vadd.xlane.f32.xlu1 %v1688_v56  ;;  %3185 = vmatpush3.msra.mxu0 %v1807_v2 }
 0x6ae   : > { %3186 = vmatprep.subr.mxu0 %v3433_v8 }
 0x6af   : > { %3187 = vmatpush3.msra.mxu0 %v1806_v4 }
 0x6b0   : > { %3189 = vmatmul.mubr.msk.f32.vlgmr.msra.gmra.mxu0 %vm794_vm0, %v785_v6  ;;  %3201 = vmatprep.subr.mxu0 %v3433_v8 }
 0x6b1   : > { %3203 = vmatprep.mubr.msk.f32.mxu0 %vm3434_vm1, %v3433_v8 }
 0x736   : > { %v1690_v57 = vpop.xlane.xlu1 %1689 }
 0x737   : > { %v1691_v58 = vmul.f32 0.03125, %v1690_v57 }
 0x739   : > { %v1692_v59 = vsub.f32 %v3770_v55, %v1691_v58 }
 0x73b   : > { %v1693_v60 = vmul.f32 %v1692_v59, %v1692_v59  ;;  %v1711_v17 = vmul.f32 %v3006_v16, %v1692_v59 }
 0x73d   : > { %v1694_v61 = vsel %vm794_vm0, %v1693_v60, 0.0 }
 0x73e   : > { %1695 = vadd.xlane.f32.xlu0 %v1694_v61 }
 0x770   : > { %v1886_v23 = vpop.f32.mrf.mxu0 }
 0x771   : > { %v3827_v24 = vadd.f32 %v3010_v22, %v1886_v23 }
 0x772   : > { %v3190_v25 = vpop.f32.mrf.mxu0 }
 0x773   : > { %2057 = vrot.lane.b32.xlu0 %v3827_v24, %s4095_s11 }
 0x7c7   : > { %v1696_v7 = vpop.xlane.xlu0 %1695 }
 0x7c8   : > { %v1697_v9 = vmul.f32 0.032258064, %v1696_v7 }
 0x7ca   : > { %3347 = vrsqrt.f32 %v1697_v9  ;;  %vm1700_vm8 = vcmp.eq.f32.partialorder %v1697_v9, inf  ;;  %v1703_v12 = vand.u32 2147483648, %v1697_v9  ;;  %vm1702_vm9 = vcmp.eq.f32.partialorder %v1697_v9, 0.0 }
 0x7d7   : > { %v3348_v10 = vpop.eup %3347 }
 0x7d8   : > { %v1699_v11 = vmul.f32 %v3348_v10, %v1697_v9 }
 0x7da   : > { %v1701_v13 = vsel %vm1700_vm8, %v1697_v9, %v1699_v11 }
 0x7db   : > { %v1704_v14 = vsel %vm1702_vm9, %v1703_v12, %v1701_v13 }
 0x7dc   : > { %v1712_v15 = vadd.f32 1e-06, %v1704_v14 }
 0x7de   : > { %3349 = vrcp.f32 %v1712_v15 }
 0x7e5   : > { %v2058_v26 = vpop.permute.xlu0 %2057 }
 0x7e6   : > { %3202 = vmatpush3.xpose.msk.msra.mxu0 %vm918_vm4, %v2058_v26 }
 0x7e7   : > { %3211 = vmatprep.subr.mxu0 %v3433_v8 }
 0x7eb   : > { %v3350_v18 = vpop.eup %3349 }
 0x7ec   : > { %v1714_v20 = vmul.f32 %v3350_v18, %v1711_v17 }
 0x7ee   : > { %v1721_v21 = vadd.f32 %v3007_v19, %v1714_v20 }
 0x7f0   : > { %3178 = vmatmul.mubr.msk.f32.vlgmr.msra.gmra.mxu1 %vm794_vm0, %v1721_v21 }
 0x7f1   : > { %3193 = vmatprep.mubr.msk.f32.mxu1 %vm3434_vm1, %v3433_v8  ;;  %3192 = vmatpush3.xpose.msk.msra.mxu1 %vm918_vm4, %v3827_v24 }
 0x7f2   : > { %3196 = vmatprep.subr.mxu1 %v3433_v8 }
 0x8b0   : > { %v1802_v28 = vpop.f32.mrf.mxu1 }
 0x8b1   : > { %v1803_v29 = vadd.f32 %v3008_v27, %v1802_v28 }
 0x8b2   : > { %v3179_v30 = vpop.f32.mrf.mxu1 }
 0x8b3   : > { %2222 = vrot.lane.b32.xlu0 %v1803_v29, %s4096_s7  ;;  %2055 = vrot.lane.b32.xlu1 %v1803_v29, %s4095_s11  ;;  %s4101_s11 = smov 80  }
 0x8b4   : > { %3194 = vmatmul.mubr.msk.f32.vlgmr.msra.gmra.mxu1 %vm918_vm4, %v1803_v29 }
 0x8b5   : > { %3198 = vmatprep.mubr.msk.f32.mxu1 %vm3434_vm1, %v3433_v8 }
 0x8b7   : > { %2389 = vrot.lane.b32.xlu0 %v1803_v29, %s4097_s8  ;;  %2224 = vrot.lane.b32.xlu1 %v3827_v24, %s4096_s7 }
 0x8bb   : > { %2391 = vrot.lane.b32.xlu1 %v3827_v24, %s4097_s8 }
 0x925   : > { %v2056_v31 = vpop.permute.xlu1 %2055  ;;  %v2223_v33 = vpop.permute.xlu0 %2222 }
 0x926   : > { %3204 = vmatmul.mubr.msk.f32.vlgmr.msra.gmra.mxu0 %vm918_vm4, %v2056_v31 }
 0x927   : > { %3213 = vmatprep.mubr.msk.f32.mxu0 %vm3434_vm1, %v3433_v8 }
 0x929   : > { %v2225_v32 = vpop.permute.xlu1 %2224  ;;  %v2390_v35 = vpop.permute.xlu0 %2389 }
 0x92a   : > { %3212 = vmatpush3.xpose.msk.msra.mxu0 %vm918_vm4, %v2225_v32 }
 0x92b   : > { %3221 = vmatprep.subr.mxu0 %v3433_v8 }
 0x92d   : > { %3214 = vmatmul.mubr.msk.f32.vlgmr.msra.gmra.mxu0 %vm918_vm4, %v2223_v33  ;;  %v2392_v34 = vpop.permute.xlu1 %2391 }
 0x92e   : > { %3222 = vmatpush3.xpose.msk.msra.mxu0 %vm918_vm4, %v2392_v34  ;;  %3223 = vmatprep.mubr.msk.f32.mxu0 %vm3434_vm1, %v3433_v8  ;;  %v2574_v34 = vld [vmem:[%s4047_s18 + $0x18] sm:$0xff] }
 0x92f   : > { %3231 = vmatprep.subr.mxu0 %v3433_v8 }
 0x931   : > { %3224 = vmatmul.mubr.msk.f32.vlgmr.msra.gmra.mxu0 %vm918_vm4, %v2390_v35  ;;  %v2573_v35 = vld [vmem:[%s4047_s18 + $0x10] sm:$0xff] }
 0x932   : > { %3239 = vmatprep.mubr.msk.f32.mxu0 %vm3434_vm1, %v3433_v8  ;;  %3232 = vmatpush3.msra.mxu0 %v2574_v34 }
 0x933   : > { %3233 = vmatprep.subr.mxu0 %v3433_v8 }
 0x934   : > { %3234 = vmatpush3.msra.mxu0 %v2573_v35 }
 0x935   : > { %3235 = vmatprep.subr.mxu0 %v3433_v8 }
 0x936   : > { %3236 = vmatpush3.msra.mxu0 %v2572_v36 }
 0x937   : > { %3237 = vmatprep.subr.mxu0 %v3433_v8 }
 0x974   : > { %v1962_v37 = vpop.f32.mrf.mxu1 }
 0x975   : > { %v1966_v39 = vmul.f32 0.35355338, %v1962_v37  ;;  %v2571_v37 = vld [vmem:[%s4047_s18] sm:$0xff] }
 0x976   : > { %v3195_v40 = vpop.f32.mrf.mxu1  ;;  %3238 = vmatpush3.msra.mxu0 %v2571_v37 }
 0x977   : > { %v1967_v41 = vadd.f32 %v1966_v39, %v791_v38  ;;  %3253 = vmatprep.subr.mxu0 %v3433_v8 }
 0x979   : > { %v1968_v42 = vsel %vm918_vm4, %v1967_v41, -inf }
 0x97a   : > { %1969 = vmax.xlane.f32.xlu1 %v1968_v42 }
 0x9e6   : > { %v2129_v43 = vpop.f32.mrf.mxu0 }
 0x9e7   : > { %v2133_v44 = vmul.f32 0.35355338, %v2129_v43 }
 0x9e8   : > { %v3205_v45 = vpop.f32.mrf.mxu0 }
 0x9e9   : > { %v2134_v46 = vadd.f32 %v2133_v44, %v791_v38 }
 0x9eb   : > { %v2135_v47 = vsel %vm918_vm4, %v2134_v46, -inf }
 0x9ec   : > { %2136 = vmax.xlane.f32.xlu0 %v2135_v47 }
 0x9ed   : > { %v2296_v48 = vpop.f32.mrf.mxu0 }
 0x9ee   : > { %v2300_v49 = vmul.f32 0.35355338, %v2296_v48 }
 0x9ef   : > { %v3215_v50 = vpop.f32.mrf.mxu0 }
 0x9f0   : > { %v2301_v51 = vadd.f32 %v2300_v49, %v791_v38 }
 0x9f1   : > { %v2463_v52 = vpop.f32.mrf.mxu0 }
 0x9f2   : > { %v2467_v53 = vmul.f32 0.35355338, %v2463_v52  ;;  %v2302_v54 = vsel %vm918_vm4, %v2301_v51, -inf }
 0x9f3   : > { %2303 = vmax.xlane.f32.xlu0 %v2302_v54  ;;  %v3225_v56 = vpop.f32.mrf.mxu0 }
 0x9f4   : > { %v2468_v57 = vadd.f32 %v2467_v53, %v791_v38 }
 0x9f6   : > { %v2469_v58 = vsel %vm918_vm4, %v2468_v57, -inf }
 0x9f7   : > { %2470 = vmax.xlane.f32.xlu1 %v2469_v58 }
 0xa03   : > { %v1970_v59 = vpop.xlane.xlu1 %1969 }
 0xa04   : > { %v1971_v60 = vsub.f32 %v1967_v41, %v1970_v59 }
 0xa06   : > { %v1972_v61 = vmul.f32 1.442695, %v1971_v60 }
 0xa08   : > { %3351 = vpow2.f32 %v1972_v61  ;;  %2146 = vrot.lane.b32.xlu1 %v3827_v24, %s4099_s4 }
 0xa15   : > { %v3352_v0 = vpop.eup %3351 }
 0xa16   : > { %v1974_v62 = vsel %vm918_vm4, %v3352_v0, 0.0 }
 0xa17   : > { %1975 = vadd.xlane.f32.xlu0 %v1974_v62  ;;  %v2694_v62 = vld [vmem:[%s4049_s20 + $0x8] sm:$0xff] }
 0xa2d   : > { %1979 = vrot.lane.b32.xlu0 %v3827_v24, %s4100_s10  ;;  %s4103_s10 = smov 8  }
 0xa75   : > { %v2137_v63 = vpop.xlane.xlu0 %2136 }
 0xa76   : > { %v2138_v1 = vsub.f32 %v2134_v46, %v2137_v63  ;;  %v2693_v63 = vld [vmem:[%s4049_s20] sm:$0xff] }
 0xa78   : > { %v2139_v2 = vmul.f32 1.442695, %v2138_v1  ;;  %v2785_v1 = vld [vmem:[%s4051_s22 + $0x38] sm:$0xff] }
 0xa7a   : > { %3353 = vpow2.f32 %v2139_v2  ;;  %v2784_v2 = vld [vmem:[%s4051_s22 + $0x30] sm:$0xff] }
 0xa7c   : > { %v2304_v3 = vpop.xlane.xlu0 %2303 }
 0xa7d   : > { %v2305_v4 = vsub.f32 %v2301_v51, %v2304_v3  ;;  %v3025_v51 = vld [vmem:[%s4048_s19] ss:$0 sm:$0xff]  ;;  %v2783_v3 = vld [vmem:[%s4051_s22 + $0x28] sm:$0xff] }
 0xa7f   : > { %v2306_v5 = vmul.f32 1.442695, %v2305_v4  ;;  %v2782_v4 = vld [vmem:[%s4051_s22 + $0x20] sm:$0xff] }
 0xa80   : > { %v2471_v6 = vpop.xlane.xlu1 %2470 }
 0xa81   : > { %3355 = vpow2.f32 %v2306_v5  ;;  %v2472_v7 = vsub.f32 %v2468_v57, %v2471_v6  ;;  %v2781_v5 = vld [vmem:[%s4051_s22 + $0x18] sm:$0xff] }
 0xa83   : > { %v2473_v9 = vmul.f32 1.442695, %v2472_v7 }
 0xa84   : > { %v2147_v20 = vpop.permute.xlu1 %2146 }
 0xa85   : > { %3357 = vpow2.f32 %v2473_v9 }
 0xa87   : > { %v3354_v10 = vpop.eup %3353 }
 0xa88   : > { %v2141_v11 = vsel %vm918_vm4, %v3354_v10, 0.0 }
 0xa89   : > { %2142 = vadd.xlane.f32.xlu1 %v2141_v11 }
 0xa8e   : > { %v3356_v12 = vpop.eup %3355 }
 0xa8f   : > { %v2308_v13 = vsel %vm918_vm4, %v3356_v12, 0.0 }
 0xa90   : > { %2309 = vadd.xlane.f32.xlu0 %v2308_v13 }
 0xa92   : > { %v3358_v14 = vpop.eup %3357 }
 0xa93   : > { %v2475_v15 = vsel %vm918_vm4, %v3358_v14, 0.0 }
 0xa94   : > { %2476 = vadd.xlane.f32.xlu1 %v2475_v15  ;;  %v3026_v15 = vld [vmem:[%s4106_s30] ss:$0 sm:$0xff]  ;;  %s765_s30 = sand.u32 1, %s3423_s26  }
 0xa95   : > { %s2983_s7 = sshll.u32 %s765_s30, 3 }
 0xa96   : > { %s767_s0 = scalar_lea.vmem [#allocation2], %s2983_s7  ;;  %s3375_s7 = sshll.u32 %s3449_s6, 4  ;;  %s3376_s7 = int_to_ptr.vmem [resolvable:$false] %s3375_s7 }
 0xa97   : > { %s2884_s1 = sshll.u32 %s767_s0, 4  ;;  %s3377_s8 = scalar_lea.vmem %s3376_s7, 256  ;;  %s2885_s1 = int_to_ptr.vmem [resolvable:$true] %s2884_s1 }
 0xa98   : > { %p3378_p0 = scmp.lt.s32.totalorder %s2885_s1, %s3376_s7 }
 0xaa0   : > { %v1976_v16 = vpop.xlane.xlu0 %1975 }
 0xaa1   : > { %3359 = vrcp.f32 %v1976_v16 }
 0xaa4   : > { %v1980_v17 = vpop.permute.xlu0 %1979 }
 0xaa5   : > { %3197 = vmatpush3.msra.mxu1 %v1980_v17  ;;  %2313 = vrot.lane.b32.xlu1 %v3827_v24, %s4101_s11  ;;  %s4104_s11 = smov 16  }
 0xaa6   : > { %2480 = vrot.lane.b32.xlu0 %v3827_v24, %s4102_s12  ;;  %3206 = vmatprep.subr.mxu1 %v3433_v8  ;;  %s4105_s12 = smov 24  }
 0xaae   : > { %v3360_v18 = vpop.eup %3359 }
 0xaaf   : > { %v1978_v19 = vmul.f32 %v3360_v18, %v3352_v0  ;;  %v2696_v0 = vld [vmem:[%s4049_s20 + $0x18] sm:$0xff]  ;;  %v3027_v18 = vld [vmem:[%s4107_s9] ss:$0 sm:$0xff]  ;;  %s3371_s9 = scalar_lea.vmem %s2885_s1, 128 }
 0xab0   : > { %p3372_p11 = scmp.ne.s32.totalorder %s2885_s1, %s3371_s9  ;;  %p3379_p1 = scmp.lt.s32.totalorder %s3377_s8, %s3371_s9 }
 0xab1   : > { %3199 = vmatmul.mubr.msk.f32.vlgmr.msra.gmra.mxu1 %vm918_vm4, %v1978_v19 }
 0xab2   : > { %3207 = vmatpush3.msra.mxu1 %v2147_v20  ;;  %3208 = vmatprep.mubr.msk.f32.mxu1 %vm3434_vm1, %v3433_v8  ;;  %p3373_p12 = pnand %p3372_p11, %p3613_p5  ;;  %p3380_p2 = por %p3379_p1, %p3378_p0 }
 0xab3   : > { %3216 = vmatprep.subr.mxu1 %v3433_v8 }
 0xab4   : > { %p3374_p13 = pneg %p3373_p12 }
 0xab6   : > { %p3381_p3 = pnand %p3380_p2, %p3374_p13 }
 0xb12   : > { %v2143_v21 = vpop.xlane.xlu1 %2142 }
 0xb13   : > { %3361 = vrcp.f32 %v2143_v21  ;;  %v2780_v21 = vld [vmem:[%s4051_s22 + $0x10] sm:$0xff] }
 0xb19   : > { %v2310_v22 = vpop.xlane.xlu0 %2309 }
 0xb1a   : > { %3363 = vrcp.f32 %v2310_v22  ;;  %v2779_v22 = vld [vmem:[%s4051_s22 + $0x8] sm:$0xff] }
 0xb1d   : > { %v2477_v23 = vpop.xlane.xlu1 %2476  ;;  %v2481_v29 = vpop.permute.xlu0 %2480 }
 0xb1e   : > { %3365 = vrcp.f32 %v2477_v23  ;;  %v2778_v23 = vld [vmem:[%s4051_s22] sm:$0xff] }
 0xb20   : > { %v3362_v24 = vpop.eup %3361 }
 0xb21   : > { %v2314_v25 = vpop.permute.xlu1 %2313  ;;  %v2145_v26 = vmul.f32 %v3362_v24, %v3354_v10  ;;  %v3028_v24 = vld [vmem:[%s4050_s21] ss:$0 sm:$0xff] }
 0xb23   : > { %3209 = vmatmul.mubr.msk.f32.vlgmr.msra.gmra.mxu1 %vm918_vm4, %v2145_v26 }
 0xb24   : > { %3217 = vmatpush3.msra.mxu1 %v2314_v25  ;;  %3218 = vmatprep.mubr.msk.f32.mxu1 %vm3434_vm1, %v3433_v8 }
 0xb25   : > { %3226 = vmatprep.subr.mxu1 %v3433_v8 }
 0xb27   : > { %v3364_v27 = vpop.eup %3363 }
 0xb28   : > { %v2312_v28 = vmul.f32 %v3364_v27, %v3356_v12 }
 0xb2a   : > { %3219 = vmatmul.mubr.msk.f32.vlgmr.msra.gmra.mxu1 %vm918_vm4, %v2312_v28 }
 0xb2b   : > { %v3366_v30 = vpop.eup %3365  ;;  %3227 = vmatpush3.msra.mxu1 %v2481_v29  ;;  %3228 = vmatprep.mubr.msk.f32.mxu1 %vm3434_vm1, %v3433_v8 }
 0xb2c   : > { %v2479_v31 = vmul.f32 %v3366_v30, %v3358_v14  ;;  %3242 = vmatprep.subr.mxu1 %v3433_v8  ;;  %v3031_v30 = vld [vmem:[%s4052_s23] ss:$0 sm:$0xff] }
 0xb2e   : > { %3229 = vmatmul.mubr.msk.f32.vlgmr.msra.gmra.mxu1 %vm918_vm4, %v2479_v31 }
 0xb2f   : > { %3250 = vmatprep.mubr.msk.f32.mxu1 %vm3434_vm1, %v3433_v8  ;;  %3243 = vmatpush3.msra.mxu1 %v2696_v0 }
 0xb30   : > { %3244 = vmatprep.subr.mxu1 %v3433_v8 }
 0xb71   : > { %v2051_v32 = vpop.f32.mrf.mxu1 }
 0xb73   : > { %v3200_v33 = vpop.f32.mrf.mxu1 }
 0xbe3   : > { %v2218_v38 = vpop.f32.mrf.mxu1 }
 0xbe4   : > { %2557 = vrot.lane.b32.xlu1 %v2218_v38, %s4103_s10 }
 0xbe5   : > { %v3210_v39 = vpop.f32.mrf.mxu1 }
 0xbea   : > { %v2385_v40 = vpop.f32.mrf.mxu1 }
 0xbeb   : > { %2561 = vrot.lane.b32.xlu0 %v2385_v40, %s4104_s11  ;;  %s2882_s11 = scalar_lea.hbm %s4053_s24, %s3033_s27 }
 0xbec   : > { %v3220_v41 = vpop.f32.mrf.mxu1 }
 0xbee   : > { %v2552_v42 = vpop.f32.mrf.mxu1 }
 0xbef   : > { %2565 = vrot.lane.b32.xlu1 %v2552_v42, %s4105_s12  ;;  %s2871_s12 = scalar_lea.sflag [#allocation3], %s765_s30 }
 0xbf0   : > { %v3230_v43 = vpop.f32.mrf.mxu1 }
 0xc56   : > { %v2558_v44 = vpop.permute.xlu1 %2557 }
 0xc57   : > { %v2568_v46 = vsel %vm918_vm4, %v2051_v32, %v2558_v44 }
 0xc5d   : > { %v2562_v45 = vpop.permute.xlu0 %2561 }
 0xc5e   : > { %v2569_v47 = vsel %vm1596_vm6, %v2568_v46, %v2562_v45 }
 0xc61   : > { %v2566_v48 = vpop.permute.xlu1 %2565 }
 0xc62   : > { %v2570_v49 = vsel %vm1598_vm7, %v2569_v47, %v2566_v48 }
 0xc63   : > { %3240 = vmatmul.mubr.msk.f32.vlgmr.msra.gmra.mxu0 %vm794_vm0, %v2570_v49 }
 0xc64   : > { %3269 = vmatprep.mubr.msk.f32.mxu0 %vm3434_vm1, %v3433_v8  ;;  %3254 = vmatpush3.msra.mxu0 %v2785_v1 }
 0xc65   : > { %3255 = vmatprep.subr.mxu0 %v3433_v8 }
 0xc66   : > { %3256 = vmatpush3.msra.mxu0 %v2784_v2 }
 0xc67   : > { %3257 = vmatprep.subr.mxu0 %v3433_v8 }
 0xc68   : > { %3258 = vmatpush3.msra.mxu0 %v2783_v3 }
 0xc69   : > { %3259 = vmatprep.subr.mxu0 %v3433_v8 }
 0xc6a   : > { %3260 = vmatpush3.msra.mxu0 %v2782_v4 }
 0xc6b   : > { %3261 = vmatprep.subr.mxu0 %v3433_v8 }
 0xc6c   : > { %3262 = vmatpush3.msra.mxu0 %v2781_v5 }
 0xc6d   : > { %3263 = vmatprep.subr.mxu0 %v3433_v8 }
 0xc6e   : > { %3264 = vmatpush3.msra.mxu0 %v2780_v21 }
 0xc6f   : > { %3265 = vmatprep.subr.mxu0 %v3433_v8 }
 0xc70   : > { %3266 = vmatpush3.msra.mxu0 %v2779_v22 }
 0xc71   : > { %3267 = vmatprep.subr.mxu0 %v3433_v8 }
 0xc72   : > { %3268 = vmatpush3.msra.mxu0 %v2778_v23 }
 0xd23   : > { %v2644_v50 = vpop.f32.mrf.mxu0 }
 0xd24   : > { %v2648_v52 = vadd.f32 %v2644_v50, %v3770_v55  ;;  %v2695_v55 = vld [vmem:[%s4049_s20 + $0x10] sm:$0xff] }
 0xd25   : > { %v3241_v53 = vpop.f32.mrf.mxu0  ;;  %3245 = vmatpush3.msra.mxu1 %v2695_v55 }
 0xd26   : > { %v3928_v54 = vadd.f32 %v3025_v51, %v2648_v52  ;;  %3246 = vmatprep.subr.mxu1 %v3433_v8 }
 0xd27   : > { %3247 = vmatpush3.msra.mxu1 %v2694_v62 }
 0xd28   : > { %v2659_v56 = vsel %vm794_vm0, %v3928_v54, 0.0  ;;  %3248 = vmatprep.subr.mxu1 %v3433_v8 }
 0xd29   : > { %2660 = vadd.xlane.f32.xlu0 %v2659_v56  ;;  %3249 = vmatpush3.msra.mxu1 %v2693_v63 }
 0xdb2   : > { %v2661_v57 = vpop.xlane.xlu0 %2660 }
 0xdb3   : > { %v2662_v58 = vmul.f32 0.03125, %v2661_v57 }
 0xdb5   : > { %v2663_v59 = vsub.f32 %v3928_v54, %v2662_v58 }
 0xdb7   : > { %v2664_v60 = vmul.f32 %v2663_v59, %v2663_v59  ;;  %v2682_v16 = vmul.f32 %v3026_v15, %v2663_v59 }
 0xdb9   : > { %v2665_v61 = vsel %vm794_vm0, %v2664_v60, 0.0 }
 0xdba   : > { %2666 = vadd.xlane.f32.xlu1 %v2665_v61 }
 0xe43   : > { %v2667_v6 = vpop.xlane.xlu1 %2666 }
 0xe44   : > { %v2668_v7 = vmul.f32 0.032258064, %v2667_v6 }
 0xe46   : > { %3367 = vrsqrt.f32 %v2668_v7  ;;  %vm2671_vm11 = vcmp.eq.f32.partialorder %v2668_v7, inf  ;;  %v2674_v11 = vand.u32 2147483648, %v2668_v7  ;;  %vm2673_vm12 = vcmp.eq.f32.partialorder %v2668_v7, 0.0 }
 0xe53   : > { %v3368_v9 = vpop.eup %3367 }
 0xe54   : > { %v2670_v10 = vmul.f32 %v3368_v9, %v2668_v7 }
 0xe56   : > { %v2672_v12 = vsel %vm2671_vm11, %v2668_v7, %v2670_v10 }
 0xe57   : > { %v2675_v13 = vsel %vm2673_vm12, %v2674_v11, %v2672_v12 }
 0xe58   : > { %v2683_v14 = vadd.f32 1e-06, %v2675_v13 }
 0xe5a   : > { %3369 = vrcp.f32 %v2683_v14 }
 0xe67   : > { %v3370_v17 = vpop.eup %3369 }
 0xe68   : > { %v2685_v19 = vmul.f32 %v3370_v17, %v2682_v16 }
 0xe6a   : > { %v2692_v20 = vadd.f32 %v3027_v18, %v2685_v19 }
 0xe6c   : > { %3251 = vmatmul.mubr.msk.f32.vlgmr.msra.gmra.mxu1 %vm794_vm0, %v2692_v20 }
 0xf2c   : > { %v2773_v25 = vpop.f32.mrf.mxu1 }
 0xf2d   : > { %v2774_v26 = vadd.f32 %v3028_v24, %v2773_v25 }
 0xf2e   : > { %v3252_v27 = vpop.f32.mrf.mxu1 }
 0xf2f   : > { %v2777_v28 = vmax.f32 %v2774_v26, 0.0 }
 0xf31   : > { %3270 = vmatmul.mubr.msk.f32.vlgmr.msra.gmra.mxu0 %vm2786_vm13, %v2777_v28 }
 0xff1   : > { %v2856_v29 = vpop.f32.mrf.mxu0 }
 0xff2   : > { %v2860_v8 = vadd.f32 %v2856_v29, %v3928_v54 }
 0xff3   : > { %v3271_v31 = vpop.f32.mrf.mxu0 }
 0xff4   : > { %v2868_v32 = vadd.f32 %v3031_v30, %v2860_v8 }
 0xff6   : > { %2869 = vst.msk [vmem:[%s767_s0] sm:$0xff] %vm794_vm0, %v2868_v32 }
 0xff7   : > { %3384 = shalt.err (!%p3381_p3)
}
 0xff8   : > { %s3385_s2 = scalar_lea.hbm %s2882_s11, 128  ;;  %s3389_s0 = scalar_lea.hbm %s4053_s24, 256 }
 0xff9   : > { %p3386_p4 = scmp.ne.s32.totalorder %s2882_s11, %s3385_s2  ;;  %p3390_p9 = scmp.lt.s32.totalorder %s2882_s11, %s4053_s24 }
 0xffa   : > { %p3391_p10 = scmp.lt.s32.totalorder %s3389_s0, %s3385_s2 }
 0xffb   : > { %p3387_p7 = pnand %p3386_p4, %p3613_p5 }
 0xffc   : > { %p3392_p11 = por %p3391_p10, %p3390_p9 }
 0xffd   : > { %p3388_p8 = pneg %p3387_p7 }
 0xfff   : > { %p3393_p12 = pnand %p3392_p11, %p3388_p8 }
0x1001   : > { %3396 = shalt.err (!%p3393_p12)
}
0x1002   : > { %3272 = dma.vmem_to_hbm [thread:$0]  (%p3613_p5), %s2885_s1, 128, %s2882_s11, %s2871_s12  }
0x1003 PF: > { %p3278_p13 = scmp.ge.s32.totalorder %s3431_s28, 2  ;;  %s2896_s9 = sand.u32 1, %s3419_s5  }
0x1004   : > { %s2897_s6 = scalar_lea.sflag [#allocation3], %s2896_s9 }
0x1005   : > { %p3275_p0 = pnand %p3278_p13, %p3617_p6 }
0x1007   : > { %p3276_p1 = pneg %p3275_p0 }
0x1009   : > { %3414 = dma.done.wait (%p3276_p1), %s2897_s6, 128  }
0x100a   : > { %3416 = vsyncadd (%p3276_p1), %s2897_s6, 4294967168  ;;  %s4108_s7 = sld [smem:[#allocation5_spill]]  ;;  %p34_p2 = scmp.ge.s32.totalorder %s3600_s29, 4  }
0x100b   : > { %s4109_s27 = sld [smem:[#allocation6_spill]]  ;;  %s4110_s5 = smov %s3423_s26 }
0x100c   : > { %s4112_s28 = smov %s3600_s29  ;;  %36 = sbr.rel (!%p34_p2) target bundleno = 17 (0x11), region = 160 }
0x1010   : > { %s4111_s26 = smov %s4108_s7 }
0x1011   :  { %2902 = vsyncpa [#allocation3], 1 }
0x1012   :  { %2904 = vsyncpa [#allocation3 + $0x1], 1 }

</bundles_post_ra>
